<compile_context>
chip_gen: v5e
topology: v5e:2x2
jax: 0.10.0
libtpu: 0.0.40
codegen_flags: <defaults>
</compile_context>

<pallas_src>
import math

import jax
import jax.numpy as jnp
from jax import lax
from jax.experimental import pallas as pl
from jax.experimental.pallas import tpu as pltpu

EMBED_DIM = 128
N_HEADS = 8
KEY_DIM = EMBED_DIM // N_HEADS        # 16
QKV_DIM = N_HEADS * KEY_DIM           # 128
FF_HIDDEN = 512
LN_EPS = 1e-5
NORM_FACTOR = 1.0 / math.sqrt(KEY_DIM)


def _layer_norm(h, gamma, beta):
    mu = jnp.mean(h, axis=-1, keepdims=True)
    var = jnp.mean((h - mu) ** 2, axis=-1, keepdims=True)
    return (h - mu) * lax.rsqrt(var + LN_EPS) * gamma + beta


# --------------------------------------------------------------------------
# Fused encoder kernel: grid = (batch, layer); activation resident in VMEM.
# --------------------------------------------------------------------------
def encoder_kernel(x_ref, wqkv_ref, wo_ref, g1_ref, b1_ref, g2_ref, b2_ref,
                   w1_ref, fb1_ref, w2_ref, fb2_ref, o_ref, act_ref):
    l = pl.program_id(1)

    @pl.when(l == 0)
    def _():
        # Load this batch row's activations once; they stay resident across layers.
        act_ref[...] = x_ref[0].astype(jnp.float32)

    x = act_ref[...]                                        # (N, D) f32

    # ---------------- LayerNorm 1 (f32) ----------------
    hn = _layer_norm(x, g1_ref[0], b1_ref[0])               # (N, D)

    # ---------------- Fused QKV projection (one lane-dense bf16 matmul) ------
    qkv = jnp.dot(hn.astype(jnp.bfloat16), wqkv_ref[0],
                  preferred_element_type=jnp.float32)       # (N, 3*H*d_k)
    q_all = qkv[:, 0 * QKV_DIM:1 * QKV_DIM].astype(jnp.bfloat16)
    k_all = qkv[:, 1 * QKV_DIM:2 * QKV_DIM].astype(jnp.bfloat16)
    v_all = qkv[:, 2 * QKV_DIM:3 * QKV_DIM].astype(jnp.bfloat16)

    # ---------------- Per-head attention (static unroll over heads) ----------
    heads = []
    for h in range(N_HEADS):
        sl = slice(h * KEY_DIM, (h + 1) * KEY_DIM)
        qh, kh, vh = q_all[:, sl], k_all[:, sl], v_all[:, sl]   # (N, d_k) bf16
        # scores: contract the last dims directly (no explicit transpose)
        s = NORM_FACTOR * lax.dot_general(
            qh, kh, (((1,), (1,)), ((), ())),
            preferred_element_type=jnp.float32)                 # (N, N) f32
        s = s - jnp.max(s, axis=-1, keepdims=True)
        e = jnp.exp(s)
        inv = pl.reciprocal(jnp.sum(e, axis=-1, keepdims=True), approx=False)
        p = e * inv
        heads.append(jnp.dot(p.astype(jnp.bfloat16), vh,
                             preferred_element_type=jnp.float32))  # (N, d_k)

    heads_cat = jnp.concatenate(heads, axis=-1)             # (N, H*d_k) f32

    # ---------------- Fused output projection ----------------
    attn_out = jnp.dot(heads_cat.astype(jnp.bfloat16), wo_ref[0],
                       preferred_element_type=jnp.float32)  # (N, D)

    h1 = attn_out + x                                       # residual 1

    # ---------------- LayerNorm 2 + FFN ----------------
    hn2 = _layer_norm(h1, g2_ref[0], b2_ref[0])
    ff = jnp.dot(hn2.astype(jnp.bfloat16), w1_ref[0],
                 preferred_element_type=jnp.float32) + fb1_ref[0]
    ff = jnp.maximum(ff, 0.0)
    ff = jnp.dot(ff.astype(jnp.bfloat16), w2_ref[0],
                 preferred_element_type=jnp.float32) + fb2_ref[0]

    out = ff + h1                                           # residual 2
    act_ref[...] = out                                      # feed next layer

    @pl.when(l == pl.num_programs(1) - 1)
    def _():
        o_ref[0] = out.astype(o_ref.dtype)


def encoder_forward_pallas(x, packed):
    """x: (B, N, D) float32. packed: dict of fused/stacked per-layer weights."""
    B, N, D = x.shape
    assert D == EMBED_DIM
    L = packed["wqkv"].shape[0]

    def wspec(shape):
        nd = len(shape)
        return pl.BlockSpec((1,) + tuple(shape[1:]),
                            lambda b, l, _nd=nd: (l,) + (0,) * (_nd - 1))

    grid_spec = pltpu.PrefetchScalarGridSpec(
        num_scalar_prefetch=0,
        grid=(B, L),
        in_specs=[
            pl.BlockSpec((1, N, D), lambda b, l: (b, 0, 0)),   # x (constant over l)
            wspec(packed["wqkv"].shape),                       # (L, D, 3*H*d_k)
            wspec(packed["wo"].shape),                         # (L, H*d_k, D)
            wspec(packed["g1"].shape), wspec(packed["b1"].shape),
            wspec(packed["g2"].shape), wspec(packed["b2"].shape),
            wspec(packed["w1"].shape), wspec(packed["fb1"].shape),
            wspec(packed["w2"].shape), wspec(packed["fb2"].shape),
        ],
        out_specs=pl.BlockSpec((1, N, D), lambda b, l: (b, 0, 0)),
        scratch_shapes=[pltpu.VMEM((N, D), jnp.float32)],
    )

    return pl.pallas_call(
        encoder_kernel,
        out_shape=jax.ShapeDtypeStruct((B, N, D), x.dtype),
        grid_spec=grid_spec,
        compiler_params=pltpu.CompilerParams(
            dimension_semantics=("parallel", "arbitrary")),
    )(x, packed["wqkv"], packed["wo"], packed["g1"], packed["b1"],
      packed["g2"], packed["b2"], packed["w1"], packed["fb1"],
      packed["w2"], packed["fb2"])


# --------------------------------------------------------------------------
# Weight packing: PyTorch layout -> fused, layer-stacked, bf16 matmul weights.
# --------------------------------------------------------------------------
def pack_params(layer_params_list, matmul_dtype=jnp.bfloat16):
    def fuse_qkv(p):
        def to2d(w):                     # (H, D, d_k) -> (D, H*d_k)
            return jnp.transpose(w, (1, 0, 2)).reshape(EMBED_DIM, QKV_DIM)
        return jnp.concatenate([to2d(p["wq"]), to2d(p["wk"]), to2d(p["wv"])],
                               axis=1)   # (D, 3*H*d_k)

    def stack(name):
        return jnp.stack([p[name] for p in layer_params_list])

    return {
        "wqkv": jnp.stack([fuse_qkv(p) for p in layer_params_list]).astype(matmul_dtype),
        "wo": jnp.stack([p["wo"].reshape(QKV_DIM, EMBED_DIM)
                         for p in layer_params_list]).astype(matmul_dtype),
        "g1": stack("g1"), "b1": stack("b1"),          # (L, 1, D) f32
        "g2": stack("g2"), "b2": stack("b2"),
        "w1": stack("w1").astype(matmul_dtype),        # (L, D, 512)
        "fb1": stack("fb1"),                           # (L, 1, 512) f32
        "w2": stack("w2").astype(matmul_dtype),        # (L, 512, D)
        "fb2": stack("fb2"),                           # (L, 1, D) f32
    }


# --------------------------------------------------------------------------
# Pure-JAX reference (same precision policy: bf16 matmul inputs, f32 accum).
# --------------------------------------------------------------------------
def encoder_forward_ref(x, packed):
    L = packed["wqkv"].shape[0]
    B, N, D = x.shape
    for l in range(L):
        wqkv, wo = packed["wqkv"][l], packed["wo"][l]
        g1, b1 = packed["g1"][l], packed["b1"][l]
        g2, b2 = packed["g2"][l], packed["b2"][l]
        w1, fb1 = packed["w1"][l], packed["fb1"][l]
        w2, fb2 = packed["w2"][l], packed["fb2"][l]
        md = wqkv.dtype

        hn = _layer_norm(x, g1, b1)
        qkv = jnp.einsum("bnd,de->bne", hn.astype(md), wqkv,
                         preferred_element_type=jnp.float32)
        q, k, v = jnp.split(qkv, 3, axis=-1)
        q = q.astype(md).reshape(B, N, N_HEADS, KEY_DIM)
        k = k.astype(md).reshape(B, N, N_HEADS, KEY_DIM)
        v = v.astype(md).reshape(B, N, N_HEADS, KEY_DIM)
        s = NORM_FACTOR * jnp.einsum("bqhe,bkhe->bhqk", q, k,
                                     preferred_element_type=jnp.float32)
        s = s - jnp.max(s, axis=-1, keepdims=True)
        e = jnp.exp(s)
        p = e / jnp.sum(e, axis=-1, keepdims=True)
        heads = jnp.einsum("bhqk,bkhe->bqhe", p.astype(md), v,
                           preferred_element_type=jnp.float32)
        heads = heads.reshape(B, N, QKV_DIM)
        attn = jnp.einsum("bnf,fd->bnd", heads.astype(md), wo,
                          preferred_element_type=jnp.float32)
        h1 = attn + x
        hn2 = _layer_norm(h1, g2, b2)
        ff = jnp.einsum("bnd,df->bnf", hn2.astype(md), w1,
                        preferred_element_type=jnp.float32) + fb1
        ff = jnp.maximum(ff, 0.0)
        ff = jnp.einsum("bnf,fd->bnd", ff.astype(md), w2,
                        preferred_element_type=jnp.float32) + fb2
        x = ff + h1
    return x


# --------------------------------------------------------------------------
# Deterministic parameter init (matches PyTorch layout / init ranges).
# --------------------------------------------------------------------------
def init_layer_params(key):
    ks = jax.random.split(key, 8)

    def unif(k, shape, stdv):
        return jax.random.uniform(k, shape, jnp.float32, minval=-stdv, maxval=stdv)

    stdv_qkv = 1.0 / math.sqrt(KEY_DIM)
    stdv_out = 1.0 / math.sqrt(EMBED_DIM)
    return {
        "g1": jnp.ones((1, EMBED_DIM), jnp.float32),
        "b1": jnp.zeros((1, EMBED_DIM), jnp.float32),
        "wq": unif(ks[0], (N_HEADS, EMBED_DIM, KEY_DIM), stdv_qkv),
        "wk": unif(ks[1], (N_HEADS, EMBED_DIM, KEY_DIM), stdv_qkv),
        "wv": unif(ks[2], (N_HEADS, EMBED_DIM, KEY_DIM), stdv_qkv),
        "wo": unif(ks[3], (N_HEADS, KEY_DIM, EMBED_DIM), stdv_out),
        "g2": jnp.ones((1, EMBED_DIM), jnp.float32),
        "b2": jnp.zeros((1, EMBED_DIM), jnp.float32),
        # nn.Linear(D,512): stored transposed (in,out) with U(-1/sqrt(in), ..)
        "w1": unif(ks[4], (EMBED_DIM, FF_HIDDEN), 1.0 / math.sqrt(EMBED_DIM)),
        "fb1": unif(ks[5], (1, FF_HIDDEN), 1.0 / math.sqrt(EMBED_DIM)),
        "w2": unif(ks[6], (FF_HIDDEN, EMBED_DIM), 1.0 / math.sqrt(FF_HIDDEN)),
        "fb2": unif(ks[7], (1, EMBED_DIM), 1.0 / math.sqrt(FF_HIDDEN)),
    }


if __name__ == "__main__":
    key = jax.random.PRNGKey(0)
    k_x, k_p = jax.random.split(key)

    B, N = 2, 8                      # batch=2, seq=8, embedding=128 (module default)
    n_layer = 1                      # Encoder(embedding_dim=128, n_head=8, n_layer=1)
    x = jax.random.normal(k_x, (B, N, EMBED_DIM), jnp.float32)

    layer_keys = jax.random.split(k_p, n_layer)
    layer_params = [init_layer_params(k) for k in layer_keys]
    packed = pack_params(layer_params)

    out = encoder_forward_pallas(x, packed)
    out = jax.block_until_ready(out)

    ref = encoder_forward_ref(x, packed)
    assert out.shape == (B, N, EMBED_DIM)
    max_err = float(jnp.max(jnp.abs(out - ref)))
    assert jnp.allclose(out, ref, atol=1e-3, rtol=1e-3), max_err

    print("KERNEL_OK")
</pallas_src>

<mosaic_0001>
module attributes {stable_mosaic.version = 11 : i64} {
  func.func @encoder_kernel(%arg0: i32, %arg1: i32, %arg2: memref<1x8x128xf32, #tpu.memory_space<vmem>>, %arg3: memref<1x128x384xbf16, #tpu.memory_space<vmem>>, %arg4: memref<1x128x128xbf16, #tpu.memory_space<vmem>>, %arg5: memref<1x1x128xf32, #tpu.memory_space<vmem>>, %arg6: memref<1x1x128xf32, #tpu.memory_space<vmem>>, %arg7: memref<1x1x128xf32, #tpu.memory_space<vmem>>, %arg8: memref<1x1x128xf32, #tpu.memory_space<vmem>>, %arg9: memref<1x128x512xbf16, #tpu.memory_space<vmem>>, %arg10: memref<1x1x512xf32, #tpu.memory_space<vmem>>, %arg11: memref<1x512x128xbf16, #tpu.memory_space<vmem>>, %arg12: memref<1x1x128xf32, #tpu.memory_space<vmem>>, %arg13: memref<1x8x128xf32, #tpu.memory_space<vmem>>, %arg14: memref<8x128xf32, #tpu.memory_space<vmem>>) attributes {dimension_semantics = [#tpu.dimension_semantics<parallel>, #tpu.dimension_semantics<arbitrary>], iteration_bounds = array<i64: 2, 1>, scalar_prefetch = 0 : i64, scratch_operands = 1 : i64, tpu.core_type = #tpu.core_type<tc>, window_params = [{transform_indices = @transform_0, window_bounds = array<i64: 1, 8, 128>}, {transform_indices = @transform_1, window_bounds = array<i64: 1, 128, 384>}, {transform_indices = @transform_2, window_bounds = array<i64: 1, 128, 128>}, {transform_indices = @transform_3, window_bounds = array<i64: 1, 1, 128>}, {transform_indices = @transform_4, window_bounds = array<i64: 1, 1, 128>}, {transform_indices = @transform_5, window_bounds = array<i64: 1, 1, 128>}, {transform_indices = @transform_6, window_bounds = array<i64: 1, 1, 128>}, {transform_indices = @transform_7, window_bounds = array<i64: 1, 128, 512>}, {transform_indices = @transform_8, window_bounds = array<i64: 1, 1, 512>}, {transform_indices = @transform_9, window_bounds = array<i64: 1, 512, 128>}, {transform_indices = @transform_10, window_bounds = array<i64: 1, 1, 128>}, {transform_indices = @transform_11, window_bounds = array<i64: 1, 8, 128>}]} {
    %c0_i32 = arith.constant 0 : i32
    %0 = arith.cmpi eq, %arg1, %c0_i32 : i32
    %1 = arith.extui %0 : i1 to i32
    %c0_i32_0 = arith.constant 0 : i32
    %2 = arith.cmpi ne, %1, %c0_i32_0 : i32
    scf.if %2 {
      %c0_90 = arith.constant 0 : index
      %c0_91 = arith.constant 0 : index
      %c0_92 = arith.constant 0 : index
      %239 = vector.load %arg2[%c0_90, %c0_91, %c0_92] : memref<1x8x128xf32, #tpu.memory_space<vmem>>, vector<1x8x128xf32>
      %240 = vector.shape_cast %239 : vector<1x8x128xf32> to vector<8x128xf32>
      %c0_93 = arith.constant 0 : index
      %c0_94 = arith.constant 0 : index
      %241 = vector.load %arg14[%c0_93, %c0_94] : memref<8x128xf32, #tpu.memory_space<vmem>>, vector<8x128xf32>
      tpu.vector_store %arg14[%c0_93, %c0_94], %240 {strides = array<i32>} : memref<8x128xf32, #tpu.memory_space<vmem>>, vector<8x128xf32>,
    } else {
    }
    %c0 = arith.constant 0 : index
    %c0_1 = arith.constant 0 : index
    %3 = vector.load %arg14[%c0, %c0_1] : memref<8x128xf32, #tpu.memory_space<vmem>>, vector<8x128xf32>
    %c0_2 = arith.constant 0 : index
    %c0_3 = arith.constant 0 : index
    %c0_4 = arith.constant 0 : index
    %4 = vector.load %arg5[%c0_2, %c0_3, %c0_4] : memref<1x1x128xf32, #tpu.memory_space<vmem>>, vector<1x1x128xf32>
    %5 = vector.shape_cast %4 : vector<1x1x128xf32> to vector<1x128xf32>
    %c0_5 = arith.constant 0 : index
    %c0_6 = arith.constant 0 : index
    %c0_7 = arith.constant 0 : index
    %6 = vector.load %arg6[%c0_5, %c0_6, %c0_7] : memref<1x1x128xf32, #tpu.memory_space<vmem>>, vector<1x1x128xf32>
    %7 = vector.shape_cast %6 : vector<1x1x128xf32> to vector<1x128xf32>
    %cst = arith.constant dense<0.000000e+00> : vector<8xf32>
    %8 = vector.multi_reduction <add>, %3, %cst [1] : vector<8x128xf32> to vector<8xf32>
    %9 = vector.shape_cast %8 : vector<8xf32> to vector<8x1xf32>
    %cst_8 = arith.constant 1.280000e+02 : f32
    %10 = vector.broadcast %cst_8 : f32 to vector<8x1xf32>
    %11 = arith.divf %9, %10 : vector<8x1xf32>
    %12 = vector.broadcast %11 : vector<8x1xf32> to vector<8x128xf32>
    %13 = arith.subf %3, %12 : vector<8x128xf32>
    %14 = arith.mulf %13, %13 : vector<8x128xf32>
    %cst_9 = arith.constant dense<0.000000e+00> : vector<8xf32>
    %15 = vector.multi_reduction <add>, %14, %cst_9 [1] : vector<8x128xf32> to vector<8xf32>
    %16 = vector.shape_cast %15 : vector<8xf32> to vector<8x1xf32>
    %cst_10 = arith.constant 1.280000e+02 : f32
    %17 = vector.broadcast %cst_10 : f32 to vector<8x1xf32>
    %18 = arith.divf %16, %17 : vector<8x1xf32>
    %19 = vector.broadcast %11 : vector<8x1xf32> to vector<8x128xf32>
    %20 = arith.subf %3, %19 : vector<8x128xf32>
    %cst_11 = arith.constant 9.99999974E-6 : f32
    %21 = vector.broadcast %cst_11 : f32 to vector<8x1xf32>
    %22 = arith.addf %18, %21 : vector<8x1xf32>
    %23 = math.rsqrt %22 : vector<8x1xf32>
    %24 = vector.broadcast %23 : vector<8x1xf32> to vector<8x128xf32>
    %25 = arith.mulf %20, %24 : vector<8x128xf32>
    %26 = vector.broadcast %5 : vector<1x128xf32> to vector<8x128xf32>
    %27 = arith.mulf %25, %26 : vector<8x128xf32>
    %28 = vector.broadcast %7 : vector<1x128xf32> to vector<8x128xf32>
    %29 = arith.addf %27, %28 : vector<8x128xf32>
    %30 = arith.truncf %29 : vector<8x128xf32> to vector<8x128xbf16>
    %c0_12 = arith.constant 0 : index
    %c0_13 = arith.constant 0 : index
    %c0_14 = arith.constant 0 : index
    %31 = vector.load %arg3[%c0_12, %c0_13, %c0_14] : memref<1x128x384xbf16, #tpu.memory_space<vmem>>, vector<1x128x384xbf16>
    %32 = vector.shape_cast %31 : vector<1x128x384xbf16> to vector<128x384xbf16>
    %cst_15 = arith.constant dense<0.000000e+00> : vector<8x384xf32>
    %33 = tpu.matmul %30, %32, %cst_15 {dimension_numbers = #tpu.dot_dimension_numbers<[1], [0], [0], [1], [0, 0, 1, 1], [], []>} : vector<8x128xbf16>, vector<128x384xbf16>, vector<8x384xf32> -> vector<8x384xf32>
    %34 = vector.extract_strided_slice %33 {offsets = [0, 0], sizes = [8, 128], strides = [1, 1]} : vector<8x384xf32> to vector<8x128xf32>
    %35 = arith.truncf %34 : vector<8x128xf32> to vector<8x128xbf16>
    %36 = vector.extract_strided_slice %33 {offsets = [0, 128], sizes = [8, 128], strides = [1, 1]} : vector<8x384xf32> to vector<8x128xf32>
    %37 = arith.truncf %36 : vector<8x128xf32> to vector<8x128xbf16>
    %38 = vector.extract_strided_slice %33 {offsets = [0, 256], sizes = [8, 128], strides = [1, 1]} : vector<8x384xf32> to vector<8x128xf32>
    %39 = arith.truncf %38 : vector<8x128xf32> to vector<8x128xbf16>
    %40 = vector.extract_strided_slice %35 {offsets = [0, 0], sizes = [8, 16], strides = [1, 1]} : vector<8x128xbf16> to vector<8x16xbf16>
    %41 = vector.extract_strided_slice %37 {offsets = [0, 0], sizes = [8, 16], strides = [1, 1]} : vector<8x128xbf16> to vector<8x16xbf16>
    %42 = vector.extract_strided_slice %39 {offsets = [0, 0], sizes = [8, 16], strides = [1, 1]} : vector<8x128xbf16> to vector<8x16xbf16>
    %cst_16 = arith.constant dense<0.000000e+00> : vector<8x8xf32>
    %43 = tpu.matmul %40, %41, %cst_16 {dimension_numbers = #tpu.dot_dimension_numbers<[1], [1], [0], [0], [0, 0, 1, 0], [], []>} : vector<8x16xbf16>, vector<8x16xbf16>, vector<8x8xf32> -> vector<8x8xf32>
    %cst_17 = arith.constant 2.500000e-01 : f32
    %44 = vector.broadcast %cst_17 : f32 to vector<8x8xf32>
    %45 = arith.mulf %44, %43 : vector<8x8xf32>
    %cst_18 = arith.constant dense<0xFF800000> : vector<8xf32>
    %46 = vector.multi_reduction <maximumf>, %45, %cst_18 [1] : vector<8x8xf32> to vector<8xf32>
    %47 = vector.shape_cast %46 : vector<8xf32> to vector<8x1xf32>
    %48 = vector.broadcast %47 : vector<8x1xf32> to vector<8x8xf32>
    %49 = arith.subf %45, %48 : vector<8x8xf32>
    %50 = math.exp %49 : vector<8x8xf32>
    %cst_19 = arith.constant dense<0.000000e+00> : vector<8xf32>
    %51 = vector.multi_reduction <add>, %50, %cst_19 [1] : vector<8x8xf32> to vector<8xf32>
    %52 = vector.shape_cast %51 : vector<8xf32> to vector<8x1xf32>
    %53 = tpu.reciprocal %52 : vector<8x1xf32> -> vector<8x1xf32>
    %54 = vector.broadcast %53 : vector<8x1xf32> to vector<8x8xf32>
    %55 = arith.mulf %50, %54 : vector<8x8xf32>
    %56 = arith.truncf %55 : vector<8x8xf32> to vector<8x8xbf16>
    %cst_20 = arith.constant dense<0.000000e+00> : vector<8x16xf32>
    %57 = tpu.matmul %56, %42, %cst_20 {dimension_numbers = #tpu.dot_dimension_numbers<[1], [0], [0], [1], [0, 0, 1, 1], [], []>} : vector<8x8xbf16>, vector<8x16xbf16>, vector<8x16xf32> -> vector<8x16xf32>
    %58 = vector.extract_strided_slice %35 {offsets = [0, 16], sizes = [8, 16], strides = [1, 1]} : vector<8x128xbf16> to vector<8x16xbf16>
    %59 = vector.extract_strided_slice %37 {offsets = [0, 16], sizes = [8, 16], strides = [1, 1]} : vector<8x128xbf16> to vector<8x16xbf16>
    %60 = vector.extract_strided_slice %39 {offsets = [0, 16], sizes = [8, 16], strides = [1, 1]} : vector<8x128xbf16> to vector<8x16xbf16>
    %cst_21 = arith.constant dense<0.000000e+00> : vector<8x8xf32>
    %61 = tpu.matmul %58, %59, %cst_21 {dimension_numbers = #tpu.dot_dimension_numbers<[1], [1], [0], [0], [0, 0, 1, 0], [], []>} : vector<8x16xbf16>, vector<8x16xbf16>, vector<8x8xf32> -> vector<8x8xf32>
    %cst_22 = arith.constant 2.500000e-01 : f32
    %62 = vector.broadcast %cst_22 : f32 to vector<8x8xf32>
    %63 = arith.mulf %62, %61 : vector<8x8xf32>
    %cst_23 = arith.constant dense<0xFF800000> : vector<8xf32>
    %64 = vector.multi_reduction <maximumf>, %63, %cst_23 [1] : vector<8x8xf32> to vector<8xf32>
    %65 = vector.shape_cast %64 : vector<8xf32> to vector<8x1xf32>
    %66 = vector.broadcast %65 : vector<8x1xf32> to vector<8x8xf32>
    %67 = arith.subf %63, %66 : vector<8x8xf32>
    %68 = math.exp %67 : vector<8x8xf32>
    %cst_24 = arith.constant dense<0.000000e+00> : vector<8xf32>
    %69 = vector.multi_reduction <add>, %68, %cst_24 [1] : vector<8x8xf32> to vector<8xf32>
    %70 = vector.shape_cast %69 : vector<8xf32> to vector<8x1xf32>
    %71 = tpu.reciprocal %70 : vector<8x1xf32> -> vector<8x1xf32>
    %72 = vector.broadcast %71 : vector<8x1xf32> to vector<8x8xf32>
    %73 = arith.mulf %68, %72 : vector<8x8xf32>
    %74 = arith.truncf %73 : vector<8x8xf32> to vector<8x8xbf16>
    %cst_25 = arith.constant dense<0.000000e+00> : vector<8x16xf32>
    %75 = tpu.matmul %74, %60, %cst_25 {dimension_numbers = #tpu.dot_dimension_numbers<[1], [0], [0], [1], [0, 0, 1, 1], [], []>} : vector<8x8xbf16>, vector<8x16xbf16>, vector<8x16xf32> -> vector<8x16xf32>
    %76 = vector.extract_strided_slice %35 {offsets = [0, 32], sizes = [8, 16], strides = [1, 1]} : vector<8x128xbf16> to vector<8x16xbf16>
    %77 = vector.extract_strided_slice %37 {offsets = [0, 32], sizes = [8, 16], strides = [1, 1]} : vector<8x128xbf16> to vector<8x16xbf16>
    %78 = vector.extract_strided_slice %39 {offsets = [0, 32], sizes = [8, 16], strides = [1, 1]} : vector<8x128xbf16> to vector<8x16xbf16>
    %cst_26 = arith.constant dense<0.000000e+00> : vector<8x8xf32>
    %79 = tpu.matmul %76, %77, %cst_26 {dimension_numbers = #tpu.dot_dimension_numbers<[1], [1], [0], [0], [0, 0, 1, 0], [], []>} : vector<8x16xbf16>, vector<8x16xbf16>, vector<8x8xf32> -> vector<8x8xf32>
    %cst_27 = arith.constant 2.500000e-01 : f32
    %80 = vector.broadcast %cst_27 : f32 to vector<8x8xf32>
    %81 = arith.mulf %80, %79 : vector<8x8xf32>
    %cst_28 = arith.constant dense<0xFF800000> : vector<8xf32>
    %82 = vector.multi_reduction <maximumf>, %81, %cst_28 [1] : vector<8x8xf32> to vector<8xf32>
    %83 = vector.shape_cast %82 : vector<8xf32> to vector<8x1xf32>
    %84 = vector.broadcast %83 : vector<8x1xf32> to vector<8x8xf32>
    %85 = arith.subf %81, %84 : vector<8x8xf32>
    %86 = math.exp %85 : vector<8x8xf32>
    %cst_29 = arith.constant dense<0.000000e+00> : vector<8xf32>
    %87 = vector.multi_reduction <add>, %86, %cst_29 [1] : vector<8x8xf32> to vector<8xf32>
    %88 = vector.shape_cast %87 : vector<8xf32> to vector<8x1xf32>
    %89 = tpu.reciprocal %88 : vector<8x1xf32> -> vector<8x1xf32>
    %90 = vector.broadcast %89 : vector<8x1xf32> to vector<8x8xf32>
    %91 = arith.mulf %86, %90 : vector<8x8xf32>
    %92 = arith.truncf %91 : vector<8x8xf32> to vector<8x8xbf16>
    %cst_30 = arith.constant dense<0.000000e+00> : vector<8x16xf32>
    %93 = tpu.matmul %92, %78, %cst_30 {dimension_numbers = #tpu.dot_dimension_numbers<[1], [0], [0], [1], [0, 0, 1, 1], [], []>} : vector<8x8xbf16>, vector<8x16xbf16>, vector<8x16xf32> -> vector<8x16xf32>
    %94 = vector.extract_strided_slice %35 {offsets = [0, 48], sizes = [8, 16], strides = [1, 1]} : vector<8x128xbf16> to vector<8x16xbf16>
    %95 = vector.extract_strided_slice %37 {offsets = [0, 48], sizes = [8, 16], strides = [1, 1]} : vector<8x128xbf16> to vector<8x16xbf16>
    %96 = vector.extract_strided_slice %39 {offsets = [0, 48], sizes = [8, 16], strides = [1, 1]} : vector<8x128xbf16> to vector<8x16xbf16>
    %cst_31 = arith.constant dense<0.000000e+00> : vector<8x8xf32>
    %97 = tpu.matmul %94, %95, %cst_31 {dimension_numbers = #tpu.dot_dimension_numbers<[1], [1], [0], [0], [0, 0, 1, 0], [], []>} : vector<8x16xbf16>, vector<8x16xbf16>, vector<8x8xf32> -> vector<8x8xf32>
    %cst_32 = arith.constant 2.500000e-01 : f32
    %98 = vector.broadcast %cst_32 : f32 to vector<8x8xf32>
    %99 = arith.mulf %98, %97 : vector<8x8xf32>
    %cst_33 = arith.constant dense<0xFF800000> : vector<8xf32>
    %100 = vector.multi_reduction <maximumf>, %99, %cst_33 [1] : vector<8x8xf32> to vector<8xf32>
    %101 = vector.shape_cast %100 : vector<8xf32> to vector<8x1xf32>
    %102 = vector.broadcast %101 : vector<8x1xf32> to vector<8x8xf32>
    %103 = arith.subf %99, %102 : vector<8x8xf32>
    %104 = math.exp %103 : vector<8x8xf32>
    %cst_34 = arith.constant dense<0.000000e+00> : vector<8xf32>
    %105 = vector.multi_reduction <add>, %104, %cst_34 [1] : vector<8x8xf32> to vector<8xf32>
    %106 = vector.shape_cast %105 : vector<8xf32> to vector<8x1xf32>
    %107 = tpu.reciprocal %106 : vector<8x1xf32> -> vector<8x1xf32>
    %108 = vector.broadcast %107 : vector<8x1xf32> to vector<8x8xf32>
    %109 = arith.mulf %104, %108 : vector<8x8xf32>
    %110 = arith.truncf %109 : vector<8x8xf32> to vector<8x8xbf16>
    %cst_35 = arith.constant dense<0.000000e+00> : vector<8x16xf32>
    %111 = tpu.matmul %110, %96, %cst_35 {dimension_numbers = #tpu.dot_dimension_numbers<[1], [0], [0], [1], [0, 0, 1, 1], [], []>} : vector<8x8xbf16>, vector<8x16xbf16>, vector<8x16xf32> -> vector<8x16xf32>
    %112 = vector.extract_strided_slice %35 {offsets = [0, 64], sizes = [8, 16], strides = [1, 1]} : vector<8x128xbf16> to vector<8x16xbf16>
    %113 = vector.extract_strided_slice %37 {offsets = [0, 64], sizes = [8, 16], strides = [1, 1]} : vector<8x128xbf16> to vector<8x16xbf16>
    %114 = vector.extract_strided_slice %39 {offsets = [0, 64], sizes = [8, 16], strides = [1, 1]} : vector<8x128xbf16> to vector<8x16xbf16>
    %cst_36 = arith.constant dense<0.000000e+00> : vector<8x8xf32>
    %115 = tpu.matmul %112, %113, %cst_36 {dimension_numbers = #tpu.dot_dimension_numbers<[1], [1], [0], [0], [0, 0, 1, 0], [], []>} : vector<8x16xbf16>, vector<8x16xbf16>, vector<8x8xf32> -> vector<8x8xf32>
    %cst_37 = arith.constant 2.500000e-01 : f32
    %116 = vector.broadcast %cst_37 : f32 to vector<8x8xf32>
    %117 = arith.mulf %116, %115 : vector<8x8xf32>
    %cst_38 = arith.constant dense<0xFF800000> : vector<8xf32>
    %118 = vector.multi_reduction <maximumf>, %117, %cst_38 [1] : vector<8x8xf32> to vector<8xf32>
    %119 = vector.shape_cast %118 : vector<8xf32> to vector<8x1xf32>
    %120 = vector.broadcast %119 : vector<8x1xf32> to vector<8x8xf32>
    %121 = arith.subf %117, %120 : vector<8x8xf32>
    %122 = math.exp %121 : vector<8x8xf32>
    %cst_39 = arith.constant dense<0.000000e+00> : vector<8xf32>
    %123 = vector.multi_reduction <add>, %122, %cst_39 [1] : vector<8x8xf32> to vector<8xf32>
    %124 = vector.shape_cast %123 : vector<8xf32> to vector<8x1xf32>
    %125 = tpu.reciprocal %124 : vector<8x1xf32> -> vector<8x1xf32>
    %126 = vector.broadcast %125 : vector<8x1xf32> to vector<8x8xf32>
    %127 = arith.mulf %122, %126 : vector<8x8xf32>
    %128 = arith.truncf %127 : vector<8x8xf32> to vector<8x8xbf16>
    %cst_40 = arith.constant dense<0.000000e+00> : vector<8x16xf32>
    %129 = tpu.matmul %128, %114, %cst_40 {dimension_numbers = #tpu.dot_dimension_numbers<[1], [0], [0], [1], [0, 0, 1, 1], [], []>} : vector<8x8xbf16>, vector<8x16xbf16>, vector<8x16xf32> -> vector<8x16xf32>
    %130 = vector.extract_strided_slice %35 {offsets = [0, 80], sizes = [8, 16], strides = [1, 1]} : vector<8x128xbf16> to vector<8x16xbf16>
    %131 = vector.extract_strided_slice %37 {offsets = [0, 80], sizes = [8, 16], strides = [1, 1]} : vector<8x128xbf16> to vector<8x16xbf16>
    %132 = vector.extract_strided_slice %39 {offsets = [0, 80], sizes = [8, 16], strides = [1, 1]} : vector<8x128xbf16> to vector<8x16xbf16>
    %cst_41 = arith.constant dense<0.000000e+00> : vector<8x8xf32>
    %133 = tpu.matmul %130, %131, %cst_41 {dimension_numbers = #tpu.dot_dimension_numbers<[1], [1], [0], [0], [0, 0, 1, 0], [], []>} : vector<8x16xbf16>, vector<8x16xbf16>, vector<8x8xf32> -> vector<8x8xf32>
    %cst_42 = arith.constant 2.500000e-01 : f32
    %134 = vector.broadcast %cst_42 : f32 to vector<8x8xf32>
    %135 = arith.mulf %134, %133 : vector<8x8xf32>
    %cst_43 = arith.constant dense<0xFF800000> : vector<8xf32>
    %136 = vector.multi_reduction <maximumf>, %135, %cst_43 [1] : vector<8x8xf32> to vector<8xf32>
    %137 = vector.shape_cast %136 : vector<8xf32> to vector<8x1xf32>
    %138 = vector.broadcast %137 : vector<8x1xf32> to vector<8x8xf32>
    %139 = arith.subf %135, %138 : vector<8x8xf32>
    %140 = math.exp %139 : vector<8x8xf32>
    %cst_44 = arith.constant dense<0.000000e+00> : vector<8xf32>
    %141 = vector.multi_reduction <add>, %140, %cst_44 [1] : vector<8x8xf32> to vector<8xf32>
    %142 = vector.shape_cast %141 : vector<8xf32> to vector<8x1xf32>
    %143 = tpu.reciprocal %142 : vector<8x1xf32> -> vector<8x1xf32>
    %144 = vector.broadcast %143 : vector<8x1xf32> to vector<8x8xf32>
    %145 = arith.mulf %140, %144 : vector<8x8xf32>
    %146 = arith.truncf %145 : vector<8x8xf32> to vector<8x8xbf16>
    %cst_45 = arith.constant dense<0.000000e+00> : vector<8x16xf32>
    %147 = tpu.matmul %146, %132, %cst_45 {dimension_numbers = #tpu.dot_dimension_numbers<[1], [0], [0], [1], [0, 0, 1, 1], [], []>} : vector<8x8xbf16>, vector<8x16xbf16>, vector<8x16xf32> -> vector<8x16xf32>
    %148 = vector.extract_strided_slice %35 {offsets = [0, 96], sizes = [8, 16], strides = [1, 1]} : vector<8x128xbf16> to vector<8x16xbf16>
    %149 = vector.extract_strided_slice %37 {offsets = [0, 96], sizes = [8, 16], strides = [1, 1]} : vector<8x128xbf16> to vector<8x16xbf16>
    %150 = vector.extract_strided_slice %39 {offsets = [0, 96], sizes = [8, 16], strides = [1, 1]} : vector<8x128xbf16> to vector<8x16xbf16>
    %cst_46 = arith.constant dense<0.000000e+00> : vector<8x8xf32>
    %151 = tpu.matmul %148, %149, %cst_46 {dimension_numbers = #tpu.dot_dimension_numbers<[1], [1], [0], [0], [0, 0, 1, 0], [], []>} : vector<8x16xbf16>, vector<8x16xbf16>, vector<8x8xf32> -> vector<8x8xf32>
    %cst_47 = arith.constant 2.500000e-01 : f32
    %152 = vector.broadcast %cst_47 : f32 to vector<8x8xf32>
    %153 = arith.mulf %152, %151 : vector<8x8xf32>
    %cst_48 = arith.constant dense<0xFF800000> : vector<8xf32>
    %154 = vector.multi_reduction <maximumf>, %153, %cst_48 [1] : vector<8x8xf32> to vector<8xf32>
    %155 = vector.shape_cast %154 : vector<8xf32> to vector<8x1xf32>
    %156 = vector.broadcast %155 : vector<8x1xf32> to vector<8x8xf32>
    %157 = arith.subf %153, %156 : vector<8x8xf32>
    %158 = math.exp %157 : vector<8x8xf32>
    %cst_49 = arith.constant dense<0.000000e+00> : vector<8xf32>
    %159 = vector.multi_reduction <add>, %158, %cst_49 [1] : vector<8x8xf32> to vector<8xf32>
    %160 = vector.shape_cast %159 : vector<8xf32> to vector<8x1xf32>
    %161 = tpu.reciprocal %160 : vector<8x1xf32> -> vector<8x1xf32>
    %162 = vector.broadcast %161 : vector<8x1xf32> to vector<8x8xf32>
    %163 = arith.mulf %158, %162 : vector<8x8xf32>
    %164 = arith.truncf %163 : vector<8x8xf32> to vector<8x8xbf16>
    %cst_50 = arith.constant dense<0.000000e+00> : vector<8x16xf32>
    %165 = tpu.matmul %164, %150, %cst_50 {dimension_numbers = #tpu.dot_dimension_numbers<[1], [0], [0], [1], [0, 0, 1, 1], [], []>} : vector<8x8xbf16>, vector<8x16xbf16>, vector<8x16xf32> -> vector<8x16xf32>
    %166 = vector.extract_strided_slice %35 {offsets = [0, 112], sizes = [8, 16], strides = [1, 1]} : vector<8x128xbf16> to vector<8x16xbf16>
    %167 = vector.extract_strided_slice %37 {offsets = [0, 112], sizes = [8, 16], strides = [1, 1]} : vector<8x128xbf16> to vector<8x16xbf16>
    %168 = vector.extract_strided_slice %39 {offsets = [0, 112], sizes = [8, 16], strides = [1, 1]} : vector<8x128xbf16> to vector<8x16xbf16>
    %cst_51 = arith.constant dense<0.000000e+00> : vector<8x8xf32>
    %169 = tpu.matmul %166, %167, %cst_51 {dimension_numbers = #tpu.dot_dimension_numbers<[1], [1], [0], [0], [0, 0, 1, 0], [], []>} : vector<8x16xbf16>, vector<8x16xbf16>, vector<8x8xf32> -> vector<8x8xf32>
    %cst_52 = arith.constant 2.500000e-01 : f32
    %170 = vector.broadcast %cst_52 : f32 to vector<8x8xf32>
    %171 = arith.mulf %170, %169 : vector<8x8xf32>
    %cst_53 = arith.constant dense<0xFF800000> : vector<8xf32>
    %172 = vector.multi_reduction <maximumf>, %171, %cst_53 [1] : vector<8x8xf32> to vector<8xf32>
    %173 = vector.shape_cast %172 : vector<8xf32> to vector<8x1xf32>
    %174 = vector.broadcast %173 : vector<8x1xf32> to vector<8x8xf32>
    %175 = arith.subf %171, %174 : vector<8x8xf32>
    %176 = math.exp %175 : vector<8x8xf32>
    %cst_54 = arith.constant dense<0.000000e+00> : vector<8xf32>
    %177 = vector.multi_reduction <add>, %176, %cst_54 [1] : vector<8x8xf32> to vector<8xf32>
    %178 = vector.shape_cast %177 : vector<8xf32> to vector<8x1xf32>
    %179 = tpu.reciprocal %178 : vector<8x1xf32> -> vector<8x1xf32>
    %180 = vector.broadcast %179 : vector<8x1xf32> to vector<8x8xf32>
    %181 = arith.mulf %176, %180 : vector<8x8xf32>
    %182 = arith.truncf %181 : vector<8x8xf32> to vector<8x8xbf16>
    %cst_55 = arith.constant dense<0.000000e+00> : vector<8x16xf32>
    %183 = tpu.matmul %182, %168, %cst_55 {dimension_numbers = #tpu.dot_dimension_numbers<[1], [0], [0], [1], [0, 0, 1, 1], [], []>} : vector<8x8xbf16>, vector<8x16xbf16>, vector<8x16xf32> -> vector<8x16xf32>
    %184 = tpu.concatenate %57, %75, %93, %111, %129, %147, %165, %183 in 1 : vector<8x16xf32>, vector<8x16xf32>, vector<8x16xf32>, vector<8x16xf32>, vector<8x16xf32>, vector<8x16xf32>, vector<8x16xf32>, vector<8x16xf32> -> vector<8x128xf32>
    %185 = arith.truncf %184 : vector<8x128xf32> to vector<8x128xbf16>
    %c0_56 = arith.constant 0 : index
    %c0_57 = arith.constant 0 : index
    %c0_58 = arith.constant 0 : index
    %186 = vector.load %arg4[%c0_56, %c0_57, %c0_58] : memref<1x128x128xbf16, #tpu.memory_space<vmem>>, vector<1x128x128xbf16>
    %187 = vector.shape_cast %186 : vector<1x128x128xbf16> to vector<128x128xbf16>
    %cst_59 = arith.constant dense<0.000000e+00> : vector<8x128xf32>
    %188 = tpu.matmul %185, %187, %cst_59 {dimension_numbers = #tpu.dot_dimension_numbers<[1], [0], [0], [1], [0, 0, 1, 1], [], []>} : vector<8x128xbf16>, vector<128x128xbf16>, vector<8x128xf32> -> vector<8x128xf32>
    %189 = arith.addf %188, %3 : vector<8x128xf32>
    %c0_60 = arith.constant 0 : index
    %c0_61 = arith.constant 0 : index
    %c0_62 = arith.constant 0 : index
    %190 = vector.load %arg7[%c0_60, %c0_61, %c0_62] : memref<1x1x128xf32, #tpu.memory_space<vmem>>, vector<1x1x128xf32>
    %191 = vector.shape_cast %190 : vector<1x1x128xf32> to vector<1x128xf32>
    %c0_63 = arith.constant 0 : index
    %c0_64 = arith.constant 0 : index
    %c0_65 = arith.constant 0 : index
    %192 = vector.load %arg8[%c0_63, %c0_64, %c0_65] : memref<1x1x128xf32, #tpu.memory_space<vmem>>, vector<1x1x128xf32>
    %193 = vector.shape_cast %192 : vector<1x1x128xf32> to vector<1x128xf32>
    %cst_66 = arith.constant dense<0.000000e+00> : vector<8xf32>
    %194 = vector.multi_reduction <add>, %189, %cst_66 [1] : vector<8x128xf32> to vector<8xf32>
    %195 = vector.shape_cast %194 : vector<8xf32> to vector<8x1xf32>
    %cst_67 = arith.constant 1.280000e+02 : f32
    %196 = vector.broadcast %cst_67 : f32 to vector<8x1xf32>
    %197 = arith.divf %195, %196 : vector<8x1xf32>
    %198 = vector.broadcast %197 : vector<8x1xf32> to vector<8x128xf32>
    %199 = arith.subf %189, %198 : vector<8x128xf32>
    %200 = arith.mulf %199, %199 : vector<8x128xf32>
    %cst_68 = arith.constant dense<0.000000e+00> : vector<8xf32>
    %201 = vector.multi_reduction <add>, %200, %cst_68 [1] : vector<8x128xf32> to vector<8xf32>
    %202 = vector.shape_cast %201 : vector<8xf32> to vector<8x1xf32>
    %cst_69 = arith.constant 1.280000e+02 : f32
    %203 = vector.broadcast %cst_69 : f32 to vector<8x1xf32>
    %204 = arith.divf %202, %203 : vector<8x1xf32>
    %205 = vector.broadcast %197 : vector<8x1xf32> to vector<8x128xf32>
    %206 = arith.subf %189, %205 : vector<8x128xf32>
    %cst_70 = arith.constant 9.99999974E-6 : f32
    %207 = vector.broadcast %cst_70 : f32 to vector<8x1xf32>
    %208 = arith.addf %204, %207 : vector<8x1xf32>
    %209 = math.rsqrt %208 : vector<8x1xf32>
    %210 = vector.broadcast %209 : vector<8x1xf32> to vector<8x128xf32>
    %211 = arith.mulf %206, %210 : vector<8x128xf32>
    %212 = vector.broadcast %191 : vector<1x128xf32> to vector<8x128xf32>
    %213 = arith.mulf %211, %212 : vector<8x128xf32>
    %214 = vector.broadcast %193 : vector<1x128xf32> to vector<8x128xf32>
    %215 = arith.addf %213, %214 : vector<8x128xf32>
    %216 = arith.truncf %215 : vector<8x128xf32> to vector<8x128xbf16>
    %c0_71 = arith.constant 0 : index
    %c0_72 = arith.constant 0 : index
    %c0_73 = arith.constant 0 : index
    %217 = vector.load %arg9[%c0_71, %c0_72, %c0_73] : memref<1x128x512xbf16, #tpu.memory_space<vmem>>, vector<1x128x512xbf16>
    %218 = vector.shape_cast %217 : vector<1x128x512xbf16> to vector<128x512xbf16>
    %cst_74 = arith.constant dense<0.000000e+00> : vector<8x512xf32>
    %219 = tpu.matmul %216, %218, %cst_74 {dimension_numbers = #tpu.dot_dimension_numbers<[1], [0], [0], [1], [0, 0, 1, 1], [], []>} : vector<8x128xbf16>, vector<128x512xbf16>, vector<8x512xf32> -> vector<8x512xf32>
    %c0_75 = arith.constant 0 : index
    %c0_76 = arith.constant 0 : index
    %c0_77 = arith.constant 0 : index
    %220 = vector.load %arg10[%c0_75, %c0_76, %c0_77] : memref<1x1x512xf32, #tpu.memory_space<vmem>>, vector<1x1x512xf32>
    %221 = vector.shape_cast %220 : vector<1x1x512xf32> to vector<1x512xf32>
    %222 = vector.broadcast %221 : vector<1x512xf32> to vector<8x512xf32>
    %223 = arith.addf %219, %222 : vector<8x512xf32>
    %cst_78 = arith.constant 0.000000e+00 : f32
    %224 = vector.broadcast %cst_78 : f32 to vector<8x512xf32>
    %225 = arith.maximumf %223, %224 : vector<8x512xf32>
    %226 = arith.truncf %225 : vector<8x512xf32> to vector<8x512xbf16>
    %c0_79 = arith.constant 0 : index
    %c0_80 = arith.constant 0 : index
    %c0_81 = arith.constant 0 : index
    %227 = vector.load %arg11[%c0_79, %c0_80, %c0_81] : memref<1x512x128xbf16, #tpu.memory_space<vmem>>, vector<1x512x128xbf16>
    %228 = vector.shape_cast %227 : vector<1x512x128xbf16> to vector<512x128xbf16>
    %cst_82 = arith.constant dense<0.000000e+00> : vector<8x128xf32>
    %229 = tpu.matmul %226, %228, %cst_82 {dimension_numbers = #tpu.dot_dimension_numbers<[1], [0], [0], [1], [0, 0, 1, 1], [], []>} : vector<8x512xbf16>, vector<512x128xbf16>, vector<8x128xf32> -> vector<8x128xf32>
    %c0_83 = arith.constant 0 : index
    %c0_84 = arith.constant 0 : index
    %c0_85 = arith.constant 0 : index
    %230 = vector.load %arg12[%c0_83, %c0_84, %c0_85] : memref<1x1x128xf32, #tpu.memory_space<vmem>>, vector<1x1x128xf32>
    %231 = vector.shape_cast %230 : vector<1x1x128xf32> to vector<1x128xf32>
    %232 = vector.broadcast %231 : vector<1x128xf32> to vector<8x128xf32>
    %233 = arith.addf %229, %232 : vector<8x128xf32>
    %234 = arith.addf %233, %189 : vector<8x128xf32>
    %c0_86 = arith.constant 0 : index
    %c0_87 = arith.constant 0 : index
    %235 = vector.load %arg14[%c0_86, %c0_87] : memref<8x128xf32, #tpu.memory_space<vmem>>, vector<8x128xf32>
    tpu.vector_store %arg14[%c0_86, %c0_87], %234 {strides = array<i32>} : memref<8x128xf32, #tpu.memory_space<vmem>>, vector<8x128xf32>,
    %c0_i32_88 = arith.constant 0 : i32
    %236 = arith.cmpi eq, %arg1, %c0_i32_88 : i32
    %237 = arith.extui %236 : i1 to i32
    %c0_i32_89 = arith.constant 0 : i32
    %238 = arith.cmpi ne, %237, %c0_i32_89 : i32
    scf.if %238 {
      %c0_90 = arith.constant 0 : index
      %c0_91 = arith.constant 0 : index
      %c0_92 = arith.constant 0 : index
      %239 = vector.load %arg13[%c0_90, %c0_91, %c0_92] : memref<1x8x128xf32, #tpu.memory_space<vmem>>, vector<1x8x128xf32>
      %240 = vector.shape_cast %239 : vector<1x8x128xf32> to vector<8x128xf32>
      %241 = vector.shape_cast %234 : vector<8x128xf32> to vector<1x8x128xf32>
      tpu.vector_store %arg13[%c0_90, %c0_91, %c0_92], %241 {strides = array<i32>} : memref<1x8x128xf32, #tpu.memory_space<vmem>>, vector<1x8x128xf32>,
    } else {
    }
    return
  }
  func.func @transform_0(%arg0: i32, %arg1: i32) -> (i32, i32, i32) {
    %c0_i32 = arith.constant 0 : i32
    %c0_i32_0 = arith.constant 0 : i32
    %c0_i32_1 = arith.constant 0 : i32
    return %arg0, %c0_i32, %c0_i32_0 : i32, i32, i32
  }
  func.func @transform_1(%arg0: i32, %arg1: i32) -> (i32, i32, i32) {
    %c0_i32 = arith.constant 0 : i32
    %c0_i32_0 = arith.constant 0 : i32
    %c0_i32_1 = arith.constant 0 : i32
    return %arg1, %c0_i32, %c0_i32_0 : i32, i32, i32
  }
  func.func @transform_2(%arg0: i32, %arg1: i32) -> (i32, i32, i32) {
    %c0_i32 = arith.constant 0 : i32
    %c0_i32_0 = arith.constant 0 : i32
    %c0_i32_1 = arith.constant 0 : i32
    return %arg1, %c0_i32, %c0_i32_0 : i32, i32, i32
  }
  func.func @transform_3(%arg0: i32, %arg1: i32) -> (i32, i32, i32) {
    %c0_i32 = arith.constant 0 : i32
    %c0_i32_0 = arith.constant 0 : i32
    %c0_i32_1 = arith.constant 0 : i32
    return %arg1, %c0_i32, %c0_i32_0 : i32, i32, i32
  }
  func.func @transform_4(%arg0: i32, %arg1: i32) -> (i32, i32, i32) {
    %c0_i32 = arith.constant 0 : i32
    %c0_i32_0 = arith.constant 0 : i32
    %c0_i32_1 = arith.constant 0 : i32
    return %arg1, %c0_i32, %c0_i32_0 : i32, i32, i32
  }
  func.func @transform_5(%arg0: i32, %arg1: i32) -> (i32, i32, i32) {
    %c0_i32 = arith.constant 0 : i32
    %c0_i32_0 = arith.constant 0 : i32
    %c0_i32_1 = arith.constant 0 : i32
    return %arg1, %c0_i32, %c0_i32_0 : i32, i32, i32
  }
  func.func @transform_6(%arg0: i32, %arg1: i32) -> (i32, i32, i32) {
    %c0_i32 = arith.constant 0 : i32
    %c0_i32_0 = arith.constant 0 : i32
    %c0_i32_1 = arith.constant 0 : i32
    return %arg1, %c0_i32, %c0_i32_0 : i32, i32, i32
  }
  func.func @transform_7(%arg0: i32, %arg1: i32) -> (i32, i32, i32) {
    %c0_i32 = arith.constant 0 : i32
    %c0_i32_0 = arith.constant 0 : i32
    %c0_i32_1 = arith.constant 0 : i32
    return %arg1, %c0_i32, %c0_i32_0 : i32, i32, i32
  }
  func.func @transform_8(%arg0: i32, %arg1: i32) -> (i32, i32, i32) {
    %c0_i32 = arith.constant 0 : i32
    %c0_i32_0 = arith.constant 0 : i32
    %c0_i32_1 = arith.constant 0 : i32
    return %arg1, %c0_i32, %c0_i32_0 : i32, i32, i32
  }
  func.func @transform_9(%arg0: i32, %arg1: i32) -> (i32, i32, i32) {
    %c0_i32 = arith.constant 0 : i32
    %c0_i32_0 = arith.constant 0 : i32
    %c0_i32_1 = arith.constant 0 : i32
    return %arg1, %c0_i32, %c0_i32_0 : i32, i32, i32
  }
  func.func @transform_10(%arg0: i32, %arg1: i32) -> (i32, i32, i32) {
    %c0_i32 = arith.constant 0 : i32
    %c0_i32_0 = arith.constant 0 : i32
    %c0_i32_1 = arith.constant 0 : i32
    return %arg1, %c0_i32, %c0_i32_0 : i32, i32, i32
  }
  func.func @transform_11(%arg0: i32, %arg1: i32) -> (i32, i32, i32) {
    %c0_i32 = arith.constant 0 : i32
    %c0_i32_0 = arith.constant 0 : i32
    %c0_i32_1 = arith.constant 0 : i32
    return %arg0, %c0_i32, %c0_i32_0 : i32, i32, i32
  }
}

</mosaic_0001>

<bundles_post_ra>
// kernel: tpu_custom_call.1
= control target key start
LH: loop header
LB: loop body
LE: loop exit
PB: predicated region body
PF: predicated region fallthrough
CT: control target
= control target key end

     0   :  { %s3785_s0 = inlined_call_operand.hbm [shape: f32[2,8,128], index: 0, kind: input, shape index: {}]   ;;  %s3786_s1 = inlined_call_operand.hbm [shape: bf16[1,128,384], index: 1, kind: input, shape index: {}]   ;;  %s3787_s2 = inlined_call_operand.hbm [shape: bf16[1,128,128], index: 2, kind: input, shape index: {}]   ;;  %s3788_s3 = inlined_call_operand.vmem [shape: f32[1,1,128], index: 3, kind: input, shape index: {}]   ;;  %s3789_s4 = inlined_call_operand.vmem [shape: f32[1,1,128], index: 4, kind: input, shape index: {}]   ;;  %s3790_s5 = inlined_call_operand.vmem [shape: f32[1,1,128], index: 5, kind: input, shape index: {}]   ;;  %s3791_s6 = inlined_call_operand.hbm [shape: f32[1,1,128], index: 6, kind: input, shape index: {}]   ;;  %s3792_s7 = inlined_call_operand.hbm [shape: bf16[1,128,512], index: 7, kind: input, shape index: {}]   ;;  %s3793_s8 = inlined_call_operand.vmem [shape: f32[1,1,512], index: 8, kind: input, shape index: {}]   ;;  %s3794_s9 = inlined_call_operand.hbm [shape: bf16[1,512,128], index: 9, kind: input, shape index: {}]   ;;  %s3795_s10 = inlined_call_operand.vmem [shape: f32[1,1,128], index: 10, kind: input, shape index: {}]   ;;  %s3796_s11 = inlined_call_operand.hbm [shape: f32[2,8,128], index: 11, kind: output, shape index: {}]  }
   0x1   :  { %3799 = sst [smem:[#allocation21_spill]] %s3786_s1 }
   0x2   :  { %3800 = sst [smem:[#allocation22_spill]] %s3787_s2 }
   0x3   :  { %3801 = sst [smem:[#allocation23_spill]] %s3791_s6 }
   0x4   :  { %3802 = sst [smem:[#allocation24_spill]] %s3795_s10 }
   0x5   :  { %3803 = sst [smem:[#allocation25_spill]] %s3796_s11 }
   0x6   :  { %16 = vsyncpa [#allocation4], 0 }
   0x7   :  { %18 = vsyncpa [#allocation4 + $0x1], 0 }
   0x8   :  { %19 = vsyncpa [#allocation7], 0 }
   0x9   :  { %20 = vsyncpa [#allocation10], 0 }
   0xa   :  { %21 = vsyncpa [#allocation13], 0 }
   0xb   :  { %22 = vsyncpa [#allocation5], 0 }
   0xc   :  { %24 = vsyncpa [#allocation5 + $0x1], 0  ;;  %s3416_s17 = smov 0   ;;  %s3418_s18 = smov 0  }
   0xd   :  { %s3420_s19 = smov 0   ;;  %s3422_s20 = smov 0  }
   0xe   :  { %s3424_s21 = smov 0   ;;  %s3426_s22 = smov 0  }
   0xf LB: > { %3804 = sst [smem:[#allocation20_spill]] %s3327_s20  ;;  %s3797_s23 = sadd.s32 4294967295, %s3335_s22   ;;  %s3335_s22 = sphi %s3426_s22, %s30_s22   ;;  %s3331_s21 = sphi %s3424_s21, %s3823_s21   ;;  %s3327_s20 = sphi %s3422_s20, %s3822_s20   ;;  %s3323_s19 = sphi %s3420_s19, %s3821_s19   ;;  %s3319_s18 = sphi %s3418_s18, %s3820_s18   ;;  %s3315_s17 = sphi %s3416_s17, %s3819_s17  }
  0x10   : > { %p2368_p0 = scmp.ge.s32.totalorder %s3335_s22, 1  ;;  %p3450_p1 = scmp.eq.s32.totalorder %s3797_s23, 0 }
  0x11   : > { %p359_p2 = scmp.lt.s32.totalorder %s3335_s22, 3  ;;  %s3806_s1 = sld [smem:[#allocation21_spill]] }
  0x12   : > { %s3337_s29 = smov [#allocation6]   ;;  %p2379_p6 = scmp.ge.s32.totalorder %s3335_s22, 2 }
  0x13   : > { %p3458_p3 = pnand %p2368_p0, %p359_p2  ;;  %s375_s30 = sshll.u32 %s3337_s29, 4  ;;  %s376_s30 = int_to_ptr.vmem [resolvable:$true] %s375_s30 }
  0x14   : > { %s3809_s6 = sld [smem:[#allocation23_spill]]  ;;  %s3338_s16 = smov 192  }
  0x15   : > { %p2914_p4 = pneg %p3458_p3  ;;  %s3339_s25 = smov 12  }
  0x16   : > { %s3340_s26 = smov [#allocation9]   ;;  %s3810_s2 = sld [smem:[#allocation22_spill]] }
  0x17   : > { %s373_s27 = sshll.u32 %s3806_s1, 4  ;;  %p3466_p5 = pnand %p2914_p4, %p3450_p1  ;;  %s374_s27 = int_to_ptr.hbm [resolvable:$true] %s373_s27 }
  0x18   : > { %s426_s29 = sshll.u32 %s3340_s26, 4  ;;  %s3341_s10 = smov [#allocation8]   ;;  %s427_s29 = int_to_ptr.vmem [resolvable:$true] %s426_s29 }
  0x19   : > { %2917 = dma.hbm_to_vmem [thread:$0]  (!%p3466_p5), %s374_s27, 3072, %s376_s30, [#allocation7], %s3338_s16, %s3338_s16, %s3339_s25  }
  0x1a   : > { %s424_s15 = sshll.u32 %s3809_s6, 4  ;;  %s392_s13 = sshll.u32 %s3341_s10, 4  ;;  %s425_s15 = int_to_ptr.hbm [resolvable:$true] %s424_s15  ;;  %s393_s13 = int_to_ptr.vmem [resolvable:$true] %s392_s13 }
  0x1b   : > { %2923 = dma.hbm_to_vmem [thread:$0]  (!%p3466_p5), %s425_s15, 16, %s427_s29, [#allocation10]  }
  0x1c   : > { %s390_s11 = sshll.u32 %s3810_s2, 4  ;;  %s438_s20 = sshll.u32 %s3792_s7, 4  ;;  %s391_s11 = int_to_ptr.hbm [resolvable:$true] %s390_s11  ;;  %s439_s20 = int_to_ptr.hbm [resolvable:$true] %s438_s20 }
  0x1d   : > { %s3342_s27 = smov 64   ;;  %s3343_s30 = smov 4  }
  0x1e   : > { %2920 = dma.hbm_to_vmem [thread:$0]  (!%p3466_p5), %s391_s11, 1024, %s393_s13, [#allocation7], %s3342_s27, %s3342_s27, %s3343_s30  }
  0x1f   : > { %s3344_s1 = smov [#allocation11]   ;;  %s3345_s10 = smov 256  }
  0x20   : > { %s440_s23 = sshll.u32 %s3344_s1, 4  ;;  %s3346_s6 = smov 16   ;;  %s441_s23 = int_to_ptr.vmem [resolvable:$true] %s440_s23 }
  0x21   : > { %2926 = dma.hbm_to_vmem [thread:$0]  (!%p3466_p5), %s439_s20, 4096, %s441_s23, [#allocation10], %s3345_s10, %s3345_s10, %s3346_s6  }
  0x22   : > { %s462_s25 = sshll.u32 %s3794_s9, 4  ;;  %s3347_s11 = smov [#allocation12]   ;;  %s463_s25 = int_to_ptr.hbm [resolvable:$true] %s462_s25 }
  0x23   : > { %s464_s26 = sshll.u32 %s3347_s11, 4  ;;  %s2367_s29 = sadd.s32 4294967294, %s3335_s22   ;;  %s465_s26 = int_to_ptr.vmem [resolvable:$true] %s464_s26 }
  0x24   : > { %2929 = dma.hbm_to_vmem [thread:$0]  (!%p3466_p5), %s463_s25, 4096, %s465_s26, [#allocation13], %s3342_s27, %s3342_s27, %s3343_s30  }
  0x25   : > { %s42_s13 = sadd.s32 1, %s3331_s21  ;;  %s49_s14 = sadd.s32 1, %s3323_s19 }
  0x26   : > { %p44_p7 = scmp.ge.s32.totalorder %s42_s13, 2  ;;  %p56_p8 = scmp.ne.s32.totalorder %s3323_s19, %s3319_s18 }
  0x27   : > { %p57_p9 = scmp.eq.s32.totalorder %s3335_s22, 0  ;;  %p62_p10 = scmp.ne.s32.totalorder %s3319_s18, %s3315_s17 }
  0x28   : > { %s3825_s13 = smov (%p44_p7, %s42_s13), 0  ;;  %s3813_s30 = sadd.s32 4294967295, %s3335_s22  }
  0x29   : > { %p3503_p11 = por %p57_p9, %p56_p8  ;;  %p3509_p12 = por %p3450_p1, %p62_p10 }
  0x2a   : > { %s46_s27 = ssub.s32 %s3331_s21, %s3825_s13  ;;  %p346_p13 = scmp.eq.s32.totalorder %s3813_s30, 1 }
  0x2b   : > { %p47_p0 = scmp.eq.s32.totalorder %s46_s27, 0  ;;  %p352_p2 = scmp.eq.s32.totalorder %s2367_s29, 1 }
  0x2c   : > { %p3517_p4 = por %p346_p13, %p56_p8  ;;  %p2943_p5 = scmp.lt.s32.totalorder %s3335_s22, 2 }
  0x2d   : > { %s3523_s23 = scalar_select %p47_p0, %s3323_s19, %s49_s14  }
  0x2e   : > { %p3525_p7 = por %p352_p2, %p62_p10  ;;  %s484_s6 = sand.u32 1, %s3323_s19  }
  0x2f   : > { %s2380_s15 = sshll.u32 %s484_s6, 3  ;;  %s2381_s16 = sshll.u32 %s3331_s21, 3 }
  0x30   : > { %s492_s26 = scalar_lea.hbm %s3785_s0, %s2381_s16  ;;  %s488_s27 = scalar_lea.vmem [#allocation3], %s2380_s15 }
  0x31   : > { %s496_s29 = sshll.u32 %s488_s27, 4  ;;  %s494_s30 = sshll.u32 %s492_s26, 4  ;;  %s497_s29 = int_to_ptr.vmem [resolvable:$true] %s496_s29  ;;  %s495_s30 = int_to_ptr.hbm [resolvable:$true] %s494_s30 }
  0x32   : > { %p2931_p8 = pnand %p2943_p5, %p3503_p11  ;;  %s485_s14 = scalar_lea.sflag [#allocation4], %s484_s6 }
  0x33   : > { %505 = sbr.rel (%p3458_p3) target bundleno = 2288 (0x8f0), region = 64  ;;  %s3539_s2 = sand.u32 (!%p3458_p3), 1, %s3319_s18  }
  0x34   : > { %2933 = dma.hbm_to_vmem [thread:$0]  (!%p2931_p8), %s495_s30, 128, %s497_s29, %s485_s14  }
  0x35   : > { %s2383_s16 = sshll.u32 (!%p3458_p3), %s3539_s2, 3  ;;  %s508_s15 = scalar_lea.sflag (!%p3458_p3), [#allocation4], %s3539_s2 }
  0x36   : > { %s3545_s25 = scalar_lea.vmem (!%p3458_p3), [#allocation3], %s2383_s16 }
  0x38   : > { %3294 = dma.done.wait (%p3509_p12), %s508_s15, 128  }
  0x39   : > { %3296 = vsyncadd (%p3509_p12), %s508_s15, 4294967168 }
  0x3a   : > { %3298 = dma.done.wait (%p3450_p1), [#allocation7], 4096  }
  0x3b   : > { %3300 = vsyncadd (%p3450_p1), [#allocation7], 4294963200 }
  0x3c   : > { %3302 = dma.done.wait (%p3450_p1), [#allocation10], 4112  }
  0x3d   : > { %3304 = vsyncadd (%p3450_p1), [#allocation10], 4294963184 }
  0x3e   : > { %3306 = dma.done.wait (%p3450_p1), [#allocation13], 4096  }
  0x3f   : > { %3308 = vsyncadd (%p3450_p1), [#allocation13], 4294963200  ;;  %v613_v0 = vld [vmem:[%s3545_s25] sm:$0xff]  ;;  %v3348_v1 = vmov 128.0   ;;  %v2476_v2 = vld [vmem:[#allocation6 + $0xa8] sm:$0xf] }
  0x40   : > { %618 = vadd.xlane.f32.xlu0 %v613_v0  ;;  %3022 = vrcp.f32 %v3348_v1  ;;  %v2816_v3 = vld [vmem:[#allocation6 + $0xb0] sm:$0xf0]  ;;  %v2815_v4 = vld [vmem:[#allocation6 + $0xac] sm:$0xf]  ;;  %v2478_v6 = vld [vmem:[#allocation6 + $0xb4] sm:$0xf0] }
  0x41   : > { %v2477_v5 = vor.u32 %v2816_v3, %v2476_v2  ;;  %v2484_v7 = vld [vmem:[#allocation6 + $0xb0] sm:$0xf]  ;;  %v2817_v8 = vld [vmem:[#allocation6 + $0xb8] sm:$0xf0]  ;;  %v2481_v9 = vor.u32 %v2815_v4, %v2478_v6  ;;  %v2812_v23 = vld [vmem:[#allocation6 + $0x94] sm:$0xf] }
  0x42   : > { %v2485_v10 = vor.u32 %v2817_v8, %v2484_v7  ;;  %v2464_v21 = vld [vmem:[#allocation6 + $0x90] sm:$0xf]  ;;  %v2813_v22 = vld [vmem:[#allocation6 + $0x98] sm:$0xf0]  ;;  %v2466_v25 = vld [vmem:[#allocation6 + $0x9c] sm:$0xf0] }
  0x43   : > { %814 = vmatpush.bf16.msra.mxu0 %v2477_v5  ;;  %827 = vmatpush.bf16.msra.mxu1 %v2481_v9  ;;  %v2465_v24 = vor.u32 %v2813_v22, %v2464_v21  ;;  %v2472_v26 = vld [vmem:[#allocation6 + $0x98] sm:$0xf]  ;;  %v2814_v27 = vld [vmem:[#allocation6 + $0xa0] sm:$0xf0]  ;;  %v2469_v28 = vor.u32 %v2812_v23, %v2466_v25  ;;  %v2809_v32 = vld [vmem:[#allocation6 + $0x7c] sm:$0xf] }
  0x44   : > { %840 = vmatpush.bf16.msra.mxu2 %v2485_v10  ;;  %v2473_v29 = vor.u32 %v2814_v27, %v2472_v26  ;;  %v2452_v30 = vld [vmem:[#allocation6 + $0x78] sm:$0xf]  ;;  %v2810_v31 = vld [vmem:[#allocation6 + $0x80] sm:$0xf0]  ;;  %v2454_v34 = vld [vmem:[#allocation6 + $0x84] sm:$0xf0] }
  0x45   : > { %v2453_v33 = vor.u32 %v2810_v31, %v2452_v30  ;;  %v2460_v35 = vld [vmem:[#allocation6 + $0x80] sm:$0xf]  ;;  %v2811_v36 = vld [vmem:[#allocation6 + $0x88] sm:$0xf0]  ;;  %v2457_v37 = vor.u32 %v2809_v32, %v2454_v34  ;;  %v2806_v41 = vld [vmem:[#allocation6 + $0x64] sm:$0xf] }
  0x46   : > { %v3023_v11 = vpop.eup %3022  ;;  %v2461_v38 = vor.u32 %v2811_v36, %v2460_v35  ;;  %v2440_v39 = vld [vmem:[#allocation6 + $0x60] sm:$0xf]  ;;  %v2807_v40 = vld [vmem:[#allocation6 + $0x68] sm:$0xf0]  ;;  %v2442_v43 = vld [vmem:[#allocation6 + $0x6c] sm:$0xf0] }
  0x47   : > { %v621_v12 = vmul.f32 128.0, %v3023_v11  ;;  %vm625_vm0 = vweird.f32 %v3023_v11  ;;  %815 = vmatpush.bf16.msra.mxu0 %v2465_v24  ;;  %828 = vmatpush.bf16.msra.mxu1 %v2469_v28  ;;  %v2441_v42 = vor.u32 %v2807_v40, %v2440_v39  ;;  %v2448_v44 = vld [vmem:[#allocation6 + $0x68] sm:$0xf]  ;;  %v2808_v45 = vld [vmem:[#allocation6 + $0x70] sm:$0xf0]  ;;  %v2445_v46 = vor.u32 %v2806_v41, %v2442_v43  ;;  %s3349_s6 = smov 96  }
  0x48   : > { %841 = vmatpush.bf16.msra.mxu2 %v2473_v29  ;;  %v2449_v47 = vor.u32 %v2808_v45, %v2448_v44  ;;  %v2428_v48 = vld [vmem:[#allocation6 + $0x48] sm:$0xf]  ;;  %v2804_v49 = vld [vmem:[#allocation6 + $0x50] sm:$0xf0]  ;;  %v2803_v50 = vld [vmem:[#allocation6 + $0x4c] sm:$0xf] }
  0x49   : > { %v622_v13 = vsub.f32 1.0, %v621_v12  ;;  %v2429_v51 = vor.u32 %v2804_v49, %v2428_v48  ;;  %v2430_v52 = vld [vmem:[#allocation6 + $0x54] sm:$0xf0]  ;;  %v2436_v53 = vld [vmem:[#allocation6 + $0x50] sm:$0xf]  ;;  %vm856_vm4 = vcmask 130048  }
  0x4a   : > { %v2805_v54 = vld [vmem:[#allocation6 + $0x58] sm:$0xf0]  ;;  %v2433_v55 = vor.u32 %v2803_v50, %v2430_v52  ;;  %v2416_v57 = vld [vmem:[#allocation6 + $0x30] sm:$0xf]  ;;  %v2800_v59 = vld [vmem:[#allocation6 + $0x34] sm:$0xf] }
  0x4b   : > { %v623_v14 = vmul.f32 %v3023_v11, %v622_v13  ;;  %816 = vmatpush.bf16.msra.mxu0 %v2453_v33  ;;  %829 = vmatpush.bf16.msra.mxu1 %v2457_v37  ;;  %v2437_v56 = vor.u32 %v2805_v54, %v2436_v53  ;;  %v2801_v58 = vld [vmem:[#allocation6 + $0x38] sm:$0xf0]  ;;  %v2418_v61 = vld [vmem:[#allocation6 + $0x3c] sm:$0xf0]  ;;  %v2424_v62 = vld [vmem:[#allocation6 + $0x38] sm:$0xf] }
  0x4c   : > { %842 = vmatpush.bf16.msra.mxu2 %v2461_v38  ;;  %v2417_v60 = vor.u32 %v2801_v58, %v2416_v57  ;;  %v2802_v63 = vld [vmem:[#allocation6 + $0x40] sm:$0xf0]  ;;  %v2404_v2 = vld [vmem:[#allocation6 + $0x18] sm:$0xf]  ;;  %v2797_v4 = vld [vmem:[#allocation6 + $0x1c] sm:$0xf] }
  0x4d   : > { %v624_v15 = vadd.f32 %v3023_v11, %v623_v14  ;;  %v2425_v1 = vor.u32 %v2802_v63, %v2424_v62  ;;  %v2798_v3 = vld [vmem:[#allocation6 + $0x20] sm:$0xf0]  ;;  %v2406_v6 = vld [vmem:[#allocation6 + $0x24] sm:$0xf0]  ;;  %v2412_v7 = vld [vmem:[#allocation6 + $0x20] sm:$0xf] }
  0x4e   : > { %v2405_v5 = vor.u32 %v2798_v3, %v2404_v2  ;;  %v2799_v8 = vld [vmem:[#allocation6 + $0x28] sm:$0xf0]  ;;  %v2409_v9 = vor.u32 %v2797_v4, %v2406_v6  ;;  %v2794_v13 = vld [vmem:[#allocation6 + $0x4] sm:$0xf]  ;;  %v3017_v31 = vld [vmem:[%s3788_s3] ss:$0 sm:$0xff] }
  0x4f   : > { %v3564_v16 = vsel %vm625_vm0, %v3023_v11, %v624_v15  ;;  %817 = vmatpush.bf16.msra.mxu0 %v2441_v42  ;;  %830 = vmatpush.bf16.msra.mxu1 %v2445_v46  ;;  %v2413_v10 = vor.u32 %v2799_v8, %v2412_v7  ;;  %v2392_v11 = vld [vmem:[#allocation6] sm:$0xf]  ;;  %v2795_v12 = vld [vmem:[#allocation6 + $0x8] sm:$0xf0]  ;;  %v2394_v15 = vld [vmem:[#allocation6 + $0xc] sm:$0xf0] }
  0x50   : > { %843 = vmatpush.bf16.msra.mxu2 %v2449_v47  ;;  %v2393_v14 = vor.u32 %v2795_v12, %v2392_v11  ;;  %v3018_v34 = vld [vmem:[%s3789_s4] ss:$0 sm:$0xff]  ;;  %s3350_s11 = smov 112   ;;  %vm906_vm5 = vcmask 1043456   ;;  %s3351_s26 = smov 48   ;;  %vm877_vm6 = vcmask 64512  }
  0x51   : > { %s3352_s27 = smov 32   ;;  %s3353_s29 = smov 16  }
  0x52   : > { %s3354_s30 = smov 80   ;;  %s3355_s14 = smov 64  }
  0x53   : > { %818 = vmatpush.bf16.msra.mxu0 %v2429_v51  ;;  %831 = vmatpush.bf16.msra.mxu1 %v2433_v55  ;;  %s3816_s20 = sld [smem:[#allocation20_spill]]  ;;  %s591_s15 = scalar_lea.vmem [#allocation14], %s2383_s16 }
  0x54   : > { %844 = vmatpush.bf16.msra.mxu2 %v2437_v56  ;;  %s2153_s28 = scalar_lea.sflag [#allocation5], %s3539_s2 }
  0x57   : > { %819 = vmatpush.bf16.msra.mxu0 %v2417_v60 }
  0x58   : > { %845 = vmatpush.bf16.msra.mxu2 %v2425_v1 }
  0x5b   : > { %820 = vmatpush.bf16.msra.mxu0 %v2405_v5 }
  0x5c   : > { %846 = vmatpush.bf16.msra.mxu2 %v2413_v10 }
  0x5f   : > { %821 = vmatpush.bf16.msra.mxu0 %v2393_v14 }
  0xb3   : > { %v619_v17 = vpop.xlane.xlu0 %618 }
  0xb4   : > { %v627_v18 = vmul.f32 %v3564_v16, %v619_v17  ;;  %v2400_v17 = vld [vmem:[#allocation6 + $0x8] sm:$0xf] }
  0xb6   : > { %v3567_v19 = vsub.f32 %v613_v0, %v627_v18  ;;  %v2421_v0 = vor.u32 %v2800_v59, %v2418_v61  ;;  %v2796_v18 = vld [vmem:[#allocation6 + $0x10] sm:$0xf0] }
  0xb7   : > { %v2401_v21 = vor.u32 %v2796_v18, %v2400_v17 }
  0xb8   : > { %v629_v20 = vmul.f32 %v3567_v19, %v3567_v19  ;;  %832 = vmatpush.bf16.msra.mxu1 %v2421_v0 }
  0xb9   : > { %847 = vmatpush.bf16.msra.mxu2 %v2401_v21 }
  0xba   : > { %630 = vadd.xlane.f32.xlu0 %v629_v20  ;;  %v2397_v20 = vor.u32 %v2794_v13, %v2394_v15 }
  0xbc   : > { %833 = vmatpush.bf16.msra.mxu1 %v2409_v9 }
  0xc0   : > { %834 = vmatpush.bf16.msra.mxu1 %v2397_v20 }
 0x12d   : > { %v631_v22 = vpop.xlane.xlu0 %630 }
 0x12e   : > { %v632_v23 = vmul.f32 %v631_v22, %v3564_v16 }
 0x130   : > { %v633_v24 = vadd.f32 1e-05, %v632_v23 }
 0x132   : > { %3024 = vrsqrt.f32 %v633_v24  ;;  %vm640_vm2 = vweird.f32 %v633_v24 }
 0x138   : > { %v3025_v25 = vpop.eup %3024 }
 0x139   : > { %v635_v26 = vmul.f32 %v3025_v25, %v633_v24  ;;  %vm641_vm1 = vweird.f32 %v3025_v25 }
 0x13a   : > { %vm642_vm3 = vmor %vm640_vm2, %vm641_vm1 }
 0x13b   : > { %v636_v27 = vmul.f32 %v3025_v25, %v635_v26 }
 0x13d   : > { %v637_v28 = vmul.f32 0.5, %v636_v27 }
 0x13f   : > { %v638_v29 = vsub.f32 1.5, %v637_v28 }
 0x141   : > { %v639_v30 = vmul.f32 %v3025_v25, %v638_v29 }
 0x143   : > { %v643_v32 = vsel %vm642_vm3, %v3025_v25, %v639_v30 }
 0x144   : > { %v644_v33 = vmul.f32 %v643_v32, %v3567_v19 }
 0x146   : > { %v648_v35 = vmul.f32 %v3017_v31, %v644_v33 }
 0x148   : > { %v652_v36 = vadd.f32 %v3018_v34, %v648_v35 }
 0x14a   : > { %v653_v37 = vpack.c.bf16 %v652_v36, %v652_v36 }
 0x14c   : > { %822 = vmatmul.bf16.vlgmr.msra.gmra.mxu0 %v653_v37  ;;  %835 = vmatmul.bf16.vlgmr.msra.gmra.mxu1 %v653_v37 }
 0x14d   : > { %848 = vmatmul.bf16.vlgmr.msra.gmra.mxu2 %v653_v37 }
 0x1c9   : > { %v823_v38 = vpop.f32.mrf.mxu0  ;;  %v836_v39 = vpop.f32.mrf.mxu1 }
 0x1ca   : > { %v854_v40 = vpack.c.bf16 %v836_v39, %v836_v39  ;;  %v853_v43 = vpack.c.bf16 %v823_v38, %v823_v38 }
 0x1cc   : > { %v929_v41 = vunpack.c.l.b16 %v854_v40  ;;  %v861_v42 = vsel %vm856_vm4, %v854_v40, 0  ;;  %v924_v48 = vunpack.c.l.b16 %v853_v43 }
 0x1cd   : > { %870 = vmatpush.bf16.xpose.msra.mxu3 %v861_v42 }
 0x1ce   : > { %v3580_v19 = vpack.c.b16 %v929_v41, %v929_v41  ;;  %v925_v50 = vpack.c.b16 %v924_v48, %v924_v48 }
 0x1d0   : > { %v849_v44 = vpop.f32.mrf.mxu2  ;;  %1004 = vrot.lane.b32.xlu0 %v3580_v19, %s3349_s6  ;;  %931 = vrot.lane.b32.xlu2 %v3580_v19, %s3350_s11 }
 0x1d1   : > { %v3586_v45 = vpack.c.bf16 %v849_v44, %v849_v44  ;;  %v825_v46 = vpop.f32.mrf.mxu0  ;;  %v838_v47 = vpop.f32.mrf.mxu1 }
 0x1d3   : > { %v908_v49 = vsel %vm906_vm5, %v3586_v45, 0 }
 0x1d4   : > { %2486 = vmatmul.msk.bf16.vlgmr.msra.gmra.mxu3 %vm856_vm4, %v853_v43 }
 0x1d5   : > { %917 = vmatpush.bf16.msrb.mxu3 %v908_v49 }
 0x1d8   : > { %v851_v51 = vpop.f32.mrf.mxu2  ;;  %1214 = vrot.lane.b32.xlu0 %v3580_v19, %s3351_s26  ;;  %926 = vrot.lane.b32.xlu2 %v925_v50, %s3350_s11 }
 0x1e0   : > { %1284 = vrot.lane.b32.xlu0 %v3580_v19, %s3352_s27  ;;  %1002 = vrot.lane.b32.xlu2 %v925_v50, %s3349_s6 }
 0x1e8   : > { %1352 = vrot.lane.b32.xlu0 %v925_v50, %s3353_s29  ;;  %1072 = vrot.lane.b32.xlu2 %v925_v50, %s3354_s30 }
 0x1f0   : > { %1144 = vrot.lane.b32.xlu2 %v3580_v19, %s3355_s14 }
 0x1f8   : > { %1142 = vrot.lane.b32.xlu2 %v925_v50, %s3355_s14 }
 0x200   : > { %1354 = vrot.lane.b32.xlu2 %v3580_v19, %s3353_s29 }
 0x22a   : > { %v932_v52 = vpop.permute.xlu2 %931 }
 0x22b   : > { %v937_v53 = vsel %vm856_vm4, %v932_v52, 0 }
 0x22c   : > { %946 = vmatpush.bf16.xpose.msra.mxu3 %v937_v53 }
 0x232   : > { %v3605_v54 = vpop.permute.xlu2 %926 }
 0x23a   : > { %v1003_v55 = vpop.permute.xlu2 %1002 }
 0x242   : > { %v1005_v56 = vpop.permute.xlu0 %1004  ;;  %v3607_v57 = vpop.permute.xlu2 %1072 }
 0x243   : > { %v1010_v58 = vsel %vm856_vm4, %v1005_v56, 0 }
 0x244   : > { %1019 = vmatpush.bf16.xpose.msrb.mxu2 %v1010_v58 }
 0x24a   : > { %v1215_v59 = vpop.permute.xlu0 %1214  ;;  %v1145_v60 = vpop.permute.xlu2 %1144 }
 0x24b   : > { %2490 = vmatmul.msk.bf16.vlgmr.msrb.gmra.mxu2 %vm856_vm4, %v1003_v55  ;;  %v1150_v61 = vsel %vm856_vm4, %v1145_v60, 0  ;;  %v1220_v36 = vsel %vm856_vm4, %v1215_v59, 0 }
 0x24c   : > { %1159 = vmatpush.bf16.xpose.msrb.mxu1 %v1150_v61 }
 0x252   : > { %v1285_v62 = vpop.permute.xlu0 %1284  ;;  %v1143_v63 = vpop.permute.xlu2 %1142 }
 0x253   : > { %v1290_v0 = vsel %vm856_vm4, %v1285_v62, 0  ;;  %2494 = vmatmul.msk.bf16.vlgmr.msrb.gmra.mxu1 %vm856_vm4, %v1143_v63 }
 0x254   : > { %1299 = vmatpush.bf16.xpose.msra.mxu1 %v1290_v0 }
 0x257   : > { %v872_v1 = vpop.f32.mrf.mxu3 }
 0x258   : > { %v876_v2 = vmul.f32 0.25, %v872_v1 }
 0x25a   : > { %v878_v3 = vsel %vm877_vm6, %v876_v2, -inf  ;;  %v1355_v38 = vpop.permute.xlu2 %1354  ;;  %v1353_v40 = vpop.permute.xlu0 %1352 }
 0x25b   : > { %879 = vmax.xlane.f32.xlu1 %v878_v3  ;;  %v1360_v39 = vsel %vm856_vm4, %v1355_v38, 0 }
 0x25f   : > { %v874_v4 = vpop.f32.mrf.mxu3 }
 0x2ce   : > { %v1021_v5 = vpop.f32.mrf.mxu2  ;;  %v880_v6 = vpop.xlane.xlu1 %879 }
 0x2cf   : > { %v881_v7 = vsub.f32 %v876_v2, %v880_v6  ;;  %v1025_v17 = vmul.f32 0.25, %v1021_v5  ;;  %v979_v5 = vunpack.c.l.b16 %v3586_v45 }
 0x2d0   : > { %v1161_v8 = vpop.f32.mrf.mxu1 }
 0x2d1   : > { %v3615_v9 = vmul.f32 0.25, %v1161_v8  ;;  %v882_v10 = vmul.f32 1.442695, %v881_v7  ;;  %v1026_v18 = vsel %vm877_vm6, %v1025_v17, -inf  ;;  %v3655_v6 = vpack.c.b16 %v979_v5, %v979_v5 }
 0x2d3   : > { %v1166_v11 = vsel %vm877_vm6, %v3615_v9, -inf  ;;  %3026 = vpow2.f32 %v882_v10 }
 0x2d4   : > { %1167 = vmax.xlane.f32.xlu2 %v1166_v11 }
 0x2d6   : > { %v1023_v12 = vpop.f32.mrf.mxu2 }
 0x2d8   : > { %v1163_v13 = vpop.f32.mrf.mxu1 }
 0x2d9   : > { %v3027_v14 = vpop.eup %3026 }
 0x2da   : > { %v884_v15 = vsel %vm877_vm6, %v3027_v14, 0.0 }
 0x2db   : > { %885 = vadd.xlane.f32.xlu1 %v884_v15 }
 0x2f4   : > { %1074 = vrot.lane.b32.xlu1 %v3580_v19, %s3354_s30 }
 0x2fc   : > { %1212 = vrot.lane.b32.xlu1 %v925_v50, %s3351_s26 }
 0x304   : > { %1282 = vrot.lane.b32.xlu1 %v925_v50, %s3352_s27 }
 0x32e   : > { %1027 = vmax.xlane.f32.xlu1 %v1026_v18 }
 0x34e   : > { %v886_v20 = vpop.xlane.xlu1 %885 }
 0x34f   : > { %3028 = vrcp.f32 %v886_v20  ;;  %v898_v24 = vand.u32 2147483648, %v886_v20  ;;  %v896_v26 = vand.u32 2147483647, %v886_v20  ;;  %vm892_vm8 = vweird.f32 %v886_v20 }
 0x351   : > { %v899_v28 = vor.u32 1.1754944e-38, %v898_v24  ;;  %vm897_vm10 = vcmp.eq.f32.partialorder %v896_v26, 8.507059e+37 }
 0x355   : > { %v3029_v21 = vpop.eup %3028 }
 0x356   : > { %v888_v22 = vmul.f32 %v3029_v21, %v886_v20  ;;  %vm893_vm7 = vweird.f32 %v3029_v21 }
 0x357   : > { %vm894_vm9 = vmor %vm892_vm8, %vm893_vm7 }
 0x358   : > { %v889_v23 = vsub.f32 1.0, %v888_v22 }
 0x35a   : > { %v890_v25 = vmul.f32 %v3029_v21, %v889_v23 }
 0x35c   : > { %v891_v27 = vadd.f32 %v3029_v21, %v890_v25 }
 0x35e   : > { %v895_v29 = vsel %vm894_vm9, %v3029_v21, %v891_v27 }
 0x35f   : > { %v900_v30 = vsel %vm897_vm10, %v899_v28, %v895_v29 }
 0x360   : > { %v901_v31 = vmul.f32 %v3027_v14, %v900_v30 }
 0x362   : > { %v902_v32 = vpack.c.bf16 %v901_v31, %v901_v31 }
 0x364   : > { %2487 = vmatmul.msk.bf16.vlgmr.msrb.gmra.mxu3 %vm877_vm6, %v902_v32 }
 0x366   : > { %v1075_v33 = vpop.permute.xlu1 %1074 }
 0x367   : > { %v1080_v34 = vsel %vm856_vm4, %v1075_v33, 0 }
 0x368   : > { %1089 = vmatpush.bf16.xpose.msrb.mxu3 %v1080_v34 }
 0x36e   : > { %v1213_v35 = vpop.permute.xlu1 %1212 }
 0x374   : > { %2488 = vmatmul.msk.bf16.vlgmr.msra.gmra.mxu3 %vm856_vm4, %v3605_v54  ;;  %v1168_v54 = vpop.xlane.xlu2 %1167 }
 0x375   : > { %1229 = vmatpush.bf16.xpose.msra.mxu3 %v1220_v36 }
 0x376   : > { %v1283_v37 = vpop.permute.xlu1 %1282 }
 0x377   : > { %2498 = vmatmul.msk.bf16.vlgmr.msra.gmra.mxu1 %vm856_vm4, %v1283_v37 }
 0x384   : > { %2492 = vmatmul.msk.bf16.vlgmr.msrb.gmra.mxu3 %vm856_vm4, %v3607_v57  ;;  %v1169_v57 = vsub.f32 %v3615_v9, %v1168_v54 }
 0x385   : > { %1369 = vmatpush.bf16.xpose.msrb.mxu3 %v1360_v39 }
 0x386   : > { %v1170_v58 = vmul.f32 1.442695, %v1169_v57 }
 0x394   : > { %2496 = vmatmul.msk.bf16.vlgmr.msra.gmra.mxu3 %vm856_vm4, %v1213_v35 }
 0x3a1   : > { %v1028_v42 = vpop.xlane.xlu1 %1027 }
 0x3a2   : > { %v1029_v43 = vsub.f32 %v1025_v17, %v1028_v42 }
 0x3a4   : > { %2500 = vmatmul.msk.bf16.vlgmr.msrb.gmra.mxu3 %vm856_vm4, %v1353_v40  ;;  %v1030_v44 = vmul.f32 1.442695, %v1029_v43 }
 0x3a6   : > { %3030 = vpow2.f32 %v1030_v44 }
 0x3a7   : > { %3032 = vpow2.f32 %v1170_v58 }
 0x3ac   : > { %v3643_v52 = vpop.eup %3030 }
 0x3ad   : > { %v1032_v56 = vsel %vm877_vm6, %v3643_v52, 0.0  ;;  %v3649_v62 = vpop.eup %3032 }
 0x3ae   : > { %v1172_v0 = vsel %vm877_vm6, %v3649_v62, 0.0 }
 0x3e7   : > { %v3636_v41 = vpop.f32.mrf.mxu3 }
 0x3ef   : > { %v921_v19 = vpop.f32.mrf.mxu3 }
 0x3f4   : > { %v1301_v46 = vpop.f32.mrf.mxu1 }
 0x3f5   : > { %v3638_v47 = vmul.f32 0.25, %v1301_v46 }
 0x3f7   : > { %v948_v48 = vpop.f32.mrf.mxu3  ;;  %v1306_v49 = vsel %vm877_vm6, %v3638_v47, -inf }
 0x3f8   : > { %v952_v50 = vmul.f32 0.25, %v948_v48  ;;  %1307 = vmax.xlane.f32.xlu0 %v1306_v49 }
 0x3fa   : > { %v953_v51 = vsel %vm877_vm6, %v952_v50, -inf }
 0x3fb   : > { %954 = vmax.xlane.f32.xlu2 %v953_v51 }
 0x3fc   : > { %v1303_v53 = vpop.f32.mrf.mxu1 }
 0x3ff   : > { %v950_v55 = vpop.f32.mrf.mxu3 }
 0x400   : > { %1033 = vadd.xlane.f32.xlu0 %v1032_v56 }
 0x407   : > { %v1091_v59 = vpop.f32.mrf.mxu3 }
 0x408   : > { %v1095_v60 = vmul.f32 0.25, %v1091_v59 }
 0x40a   : > { %v1096_v61 = vsel %vm877_vm6, %v1095_v60, -inf }
 0x40b   : > { %1097 = vmax.xlane.f32.xlu0 %v1096_v61 }
 0x40f   : > { %v1093_v63 = vpop.f32.mrf.mxu3 }
 0x413   : > { %1173 = vadd.xlane.f32.xlu0 %v1172_v0 }
 0x417   : > { %v1231_v1 = vpop.f32.mrf.mxu3 }
 0x418   : > { %v1235_v2 = vmul.f32 0.25, %v1231_v1 }
 0x41a   : > { %v1236_v3 = vsel %vm877_vm6, %v1235_v2, -inf }
 0x41b   : > { %1237 = vmax.xlane.f32.xlu1 %v1236_v3 }
 0x41f   : > { %v1233_v4 = vpop.f32.mrf.mxu3 }
 0x427   : > { %1121 = vrot.lane.b32.xlu0 %v3655_v6, %s3354_s30  ;;  %v1371_v7 = vpop.f32.mrf.mxu3 }
 0x428   : > { %v1375_v8 = vmul.f32 0.25, %v1371_v7 }
 0x42a   : > { %v1376_v9 = vsel %vm877_vm6, %v1375_v8, -inf }
 0x42b   : > { %1377 = vmax.xlane.f32.xlu2 %v1376_v9 }
 0x42f   : > { %v1373_v10 = vpop.f32.mrf.mxu3 }
 0x443   : > { %1051 = vrot.lane.b32.xlu2 %v3655_v6, %s3349_s6 }
 0x46b   : > { %v1308_v11 = vpop.xlane.xlu0 %1307 }
 0x46c   : > { %v1309_v44 = vsub.f32 %v3638_v47, %v1308_v11 }
 0x46e   : > { %v955_v12 = vpop.xlane.xlu2 %954  ;;  %v1310_v46 = vmul.f32 1.442695, %v1309_v44 }
 0x46f   : > { %v956_v13 = vsub.f32 %v952_v50, %v955_v12 }
 0x471   : > { %v957_v14 = vmul.f32 1.442695, %v956_v13 }
 0x473   : > { %3034 = vpow2.f32 %v957_v14  ;;  %v1034_v45 = vpop.xlane.xlu0 %1033 }
 0x474   : > { %v1046_v34 = vand.u32 2147483648, %v1034_v45  ;;  %vm1040_vm12 = vweird.f32 %v1034_v45  ;;  %v1044_v35 = vand.u32 2147483647, %v1034_v45 }
 0x476   : > { %v1047_v38 = vor.u32 1.1754944e-38, %v1046_v34  ;;  %vm1045_vm14 = vcmp.eq.f32.partialorder %v1044_v35, 8.507059e+37 }
 0x479   : > { %v3662_v15 = vpop.eup %3034 }
 0x47a   : > { %v959_v17 = vsel %vm877_vm6, %v3662_v15, 0.0 }
 0x47b   : > { %960 = vadd.xlane.f32.xlu1 %v959_v17 }
 0x47e   : > { %v1098_v18 = vpop.xlane.xlu0 %1097 }
 0x47f   : > { %v1099_v20 = vsub.f32 %v1095_v60, %v1098_v18 }
 0x481   : > { %v1100_v21 = vmul.f32 1.442695, %v1099_v20 }
 0x483   : > { %3036 = vpow2.f32 %v1100_v21 }
 0x484   : > { %3038 = vrcp.f32 %v1034_v45 }
 0x486   : > { %v1174_v53 = vpop.xlane.xlu0 %1173 }
 0x487   : > { %vm1180_vm1 = vweird.f32 %v1174_v53  ;;  %v1186_v1 = vand.u32 2147483648, %v1174_v53  ;;  %v1184_v4 = vand.u32 2147483647, %v1174_v53 }
 0x489   : > { %v3666_v22 = vpop.eup %3036  ;;  %v1187_v9 = vor.u32 1.1754944e-38, %v1186_v1  ;;  %vm1185_vm8 = vcmp.eq.f32.partialorder %v1184_v4, 8.507059e+37 }
 0x48a   : > { %v1102_v23 = vsel %vm877_vm6, %v3666_v22, 0.0  ;;  %v3039_v24 = vpop.eup %3038 }
 0x48b   : > { %1103 = vadd.xlane.f32.xlu2 %v1102_v23  ;;  %v1036_v26 = vmul.f32 %v3039_v24, %v1034_v45  ;;  %vm1041_vm11 = vweird.f32 %v3039_v24 }
 0x48c   : > { %vm1042_vm13 = vmor %vm1040_vm12, %vm1041_vm11 }
 0x48d   : > { %v1037_v29 = vsub.f32 1.0, %v1036_v26 }
 0x48e   : > { %v1238_v25 = vpop.xlane.xlu1 %1237 }
 0x48f   : > { %v1239_v27 = vsub.f32 %v1235_v2, %v1238_v25  ;;  %v1038_v30 = vmul.f32 %v3039_v24, %v1037_v29 }
 0x491   : > { %v1240_v28 = vmul.f32 1.442695, %v1239_v27  ;;  %v1039_v33 = vadd.f32 %v3039_v24, %v1038_v30 }
 0x493   : > { %3040 = vpow2.f32 %v1240_v28  ;;  %v1043_v37 = vsel %vm1042_vm13, %v3039_v24, %v1039_v33 }
 0x494   : > { %981 = vrot.lane.b32.xlu1 %v3655_v6, %s3350_s11  ;;  %v1048_v39 = vsel %vm1045_vm14, %v1047_v38, %v1043_v37  ;;  %3042 = vpow2.f32 %v1310_v46 }
 0x495   : > { %v1049_v40 = vmul.f32 %v3643_v52, %v1048_v39 }
 0x497   : > { %v1050_v19 = vpack.c.bf16 %v1049_v40, %v1049_v40 }
 0x499   : > { %v3672_v31 = vpop.eup %3040  ;;  %v1122_v45 = vpop.permute.xlu0 %1121 }
 0x49a   : > { %v1242_v32 = vsel %vm877_vm6, %v3672_v31, 0.0  ;;  %v3686_v48 = vpop.eup %3042  ;;  %v1127_v25 = vsel %vm906_vm5, %v1122_v45, 0 }
 0x49b   : > { %1243 = vadd.xlane.f32.xlu0 %v1242_v32  ;;  %v1312_v50 = vsel %vm877_vm6, %v3686_v48, 0.0 }
 0x49e   : > { %v1378_v36 = vpop.xlane.xlu2 %1377 }
 0x49f   : > { %v1379_v49 = vsub.f32 %v1375_v8, %v1378_v36 }
 0x4a1   : > { %v1380_v51 = vmul.f32 1.442695, %v1379_v49 }
 0x4a3   : > { %1191 = vrot.lane.b32.xlu2 %v3655_v6, %s3355_s14  ;;  %3044 = vpow2.f32 %v1380_v51 }
 0x4a4   : > { %3046 = vrcp.f32 %v1174_v53 }
 0x4a6   : > { %v1052_v42 = vpop.permute.xlu2 %1051 }
 0x4a7   : > { %v1057_v43 = vsel %vm906_vm5, %v1052_v42, 0 }
 0x4a8   : > { %1066 = vmatpush.bf16.msra.mxu2 %v1057_v43 }
 0x4a9   : > { %v3692_v47 = vpop.eup %3044 }
 0x4aa   : > { %v1382_v52 = vsel %vm877_vm6, %v3692_v47, 0.0  ;;  %v3047_v54 = vpop.eup %3046 }
 0x4ab   : > { %2491 = vmatmul.msk.bf16.vlgmr.msra.gmra.mxu2 %vm877_vm6, %v1050_v19  ;;  %v1176_v56 = vmul.f32 %v3047_v54, %v1174_v53  ;;  %vm1181_vm15 = vweird.f32 %v3047_v54 }
 0x4ac   : > { %vm1182_vm2 = vmor %vm1180_vm1, %vm1181_vm15 }
 0x4ad   : > { %v1177_v57 = vsub.f32 1.0, %v1176_v56 }
 0x4af   : > { %1261 = vrot.lane.b32.xlu0 %v3655_v6, %s3351_s26  ;;  %v1178_v60 = vmul.f32 %v3047_v54, %v1177_v57 }
 0x4b1   : > { %v1179_v0 = vadd.f32 %v3047_v54, %v1178_v60 }
 0x4b3   : > { %v1183_v7 = vsel %vm1182_vm2, %v3047_v54, %v1179_v0 }
 0x4b4   : > { %v1188_v11 = vsel %vm1185_vm8, %v1187_v9, %v1183_v7 }
 0x4b5   : > { %v1189_v14 = vmul.f32 %v3649_v62, %v1188_v11 }
 0x4b7   : > { %1331 = vrot.lane.b32.xlu0 %v3655_v6, %s3352_s27  ;;  %v1190_v28 = vpack.c.bf16 %v1189_v14, %v1189_v14 }
 0x4be   : > { %1313 = vadd.xlane.f32.xlu1 %v1312_v50 }
 0x4bf   : > { %1401 = vrot.lane.b32.xlu0 %v3655_v6, %s3353_s29 }
 0x4cc   : > { %1383 = vadd.xlane.f32.xlu2 %v1382_v52 }
 0x4ee   : > { %v961_v55 = vpop.xlane.xlu1 %960 }
 0x4ef   : > { %3048 = vrcp.f32 %v961_v55  ;;  %v973_v3 = vand.u32 2147483648, %v961_v55  ;;  %vm967_vm3 = vweird.f32 %v961_v55  ;;  %v971_v5 = vand.u32 2147483647, %v961_v55 }
 0x4f1   : > { %v974_v10 = vor.u32 1.1754944e-38, %v973_v3  ;;  %vm972_vm9 = vcmp.eq.f32.partialorder %v971_v5, 8.507059e+37 }
 0x4f5   : > { %v3049_v58 = vpop.eup %3048 }
 0x4f6   : > { %v963_v59 = vmul.f32 %v3049_v58, %v961_v55  ;;  %vm968_vm0 = vweird.f32 %v3049_v58 }
 0x4f7   : > { %vm969_vm7 = vmor %vm967_vm3, %vm968_vm0 }
 0x4f8   : > { %v964_v61 = vsub.f32 1.0, %v963_v59 }
 0x4fa   : > { %v965_v63 = vmul.f32 %v3049_v58, %v964_v61 }
 0x4fc   : > { %v966_v2 = vadd.f32 %v3049_v58, %v965_v63 }
 0x4fe   : > { %v1104_v6 = vpop.xlane.xlu2 %1103  ;;  %v970_v8 = vsel %vm969_vm7, %v3049_v58, %v966_v2 }
 0x4ff   : > { %3050 = vrcp.f32 %v1104_v6  ;;  %v975_v12 = vsel %vm972_vm9, %v974_v10, %v970_v8  ;;  %vm1110_vm11 = vweird.f32 %v1104_v6  ;;  %v1114_v30 = vand.u32 2147483647, %v1104_v6 }
 0x500   : > { %v976_v17 = vmul.f32 %v3662_v15, %v975_v12  ;;  %v1116_v15 = vand.u32 2147483648, %v1104_v6 }
 0x501   : > { %vm1115_vm13 = vcmp.eq.f32.partialorder %v1114_v30, 8.507059e+37 }
 0x502   : > { %v977_v27 = vpack.c.bf16 %v976_v17, %v976_v17  ;;  %v1117_v34 = vor.u32 1.1754944e-38, %v1116_v15 }
 0x505   : > { %v3051_v13 = vpop.eup %3050 }
 0x506   : > { %v1106_v18 = vmul.f32 %v3051_v13, %v1104_v6  ;;  %v982_v20 = vpop.permute.xlu1 %981  ;;  %v1192_v21 = vpop.permute.xlu2 %1191  ;;  %vm1111_vm10 = vweird.f32 %v3051_v13 }
 0x507   : > { %v1197_v23 = vsel %vm906_vm5, %v1192_v21, 0  ;;  %v987_v24 = vsel %vm906_vm5, %v982_v20, 0  ;;  %vm1112_vm12 = vmor %vm1110_vm11, %vm1111_vm10 }
 0x508   : > { %v1107_v26 = vsub.f32 1.0, %v1106_v18  ;;  %996 = vmatpush.bf16.msrb.mxu0 %v987_v24  ;;  %1206 = vmatpush.bf16.msrb.mxu2 %v1197_v23 }
 0x50a   : > { %v1108_v29 = vmul.f32 %v3051_v13, %v1107_v26 }
 0x50b   : > { %2489 = vmatmul.msk.bf16.vlgmr.msrb.gmra.mxu0 %vm877_vm6, %v977_v27  ;;  %2495 = vmatmul.msk.bf16.vlgmr.msrb.gmra.mxu2 %vm877_vm6, %v1190_v28 }
 0x50c   : > { %1136 = vmatpush.bf16.msra.mxu0 %v1127_v25  ;;  %v1109_v62 = vadd.f32 %v3051_v13, %v1108_v29 }
 0x50e   : > { %v1244_v32 = vpop.xlane.xlu0 %1243  ;;  %v1113_v33 = vsel %vm1112_vm12, %v3051_v13, %v1109_v62  ;;  %vm1453_vm12 = vcmask 392192  }
 0x50f   : > { %3052 = vrcp.f32 %v1244_v32  ;;  %v1118_v35 = vsel %vm1115_vm13, %v1117_v34, %v1113_v33  ;;  %v1256_v19 = vand.u32 2147483648, %v1244_v32  ;;  %vm1250_vm15 = vweird.f32 %v1244_v32  ;;  %v2825_v34 = vld [vmem:[#allocation8 + $0x38] sm:$0xff] }
 0x510   : > { %v1119_v37 = vmul.f32 %v3666_v22, %v1118_v35  ;;  %v1254_v44 = vand.u32 2147483647, %v1244_v32  ;;  %1528 = vmatpush.bf16.msrb.mxu1 %v2825_v34  ;;  %v2824_v35 = vld [vmem:[#allocation8 + $0x30] sm:$0xff]  ;;  %vm1455_vm13 = vcmask 523264  }
 0x511   : > { %v1257_v49 = vor.u32 1.1754944e-38, %v1256_v19 }
 0x512   : > { %v1120_v40 = vpack.c.bf16 %v1119_v37, %v1119_v37  ;;  %vm1255_vm1 = vcmp.eq.f32.partialorder %v1254_v44, 8.507059e+37  ;;  %v2822_v37 = vld [vmem:[#allocation8 + $0x20] sm:$0xff] }
 0x514   : > { %1529 = vmatpush.bf16.msrb.mxu1 %v2824_v35  ;;  %v2847_v35 = vld [vmem:[#allocation11 + $0xac] sm:$0xf] }
 0x515   : > { %v3053_v36 = vpop.eup %3052 }
 0x516   : > { %v1246_v38 = vmul.f32 %v3053_v36, %v1244_v32  ;;  %vm1251_vm14 = vweird.f32 %v3053_v36 }
 0x517   : > { %vm1252_vm0 = vmor %vm1250_vm15, %vm1251_vm14  ;;  %vm1457_vm14 = vcmask 654336   ;;  %vm1459_vm15 = vcmask 785408  }
 0x518   : > { %v1247_v39 = vsub.f32 1.0, %v1246_v38  ;;  %v2821_v38 = vld [vmem:[#allocation8 + $0x18] sm:$0xff] }
 0x51a   : > { %v1248_v42 = vmul.f32 %v3053_v36, %v1247_v39  ;;  %v2820_v39 = vld [vmem:[#allocation8 + $0x10] sm:$0xff] }
 0x51b   : > { %2493 = vmatmul.msk.bf16.vlgmr.msra.gmra.mxu0 %vm877_vm6, %v1120_v40  ;;  %v2819_v40 = vld [vmem:[#allocation8 + $0x8] sm:$0xff] }
 0x51c   : > { %v1249_v43 = vadd.f32 %v3053_v36, %v1248_v42  ;;  %v2818_v42 = vld [vmem:[#allocation8] sm:$0xff] }
 0x51e   : > { %v1253_v46 = vsel %vm1252_vm0, %v3053_v36, %v1249_v43  ;;  %v2823_v36 = vld [vmem:[#allocation8 + $0x28] sm:$0xff]  ;;  %vm1461_vm0 = vcmask 916480  }
 0x51f   : > { %v1258_v51 = vsel %vm1255_vm1, %v1257_v49, %v1253_v46  ;;  %1530 = vmatpush.bf16.msrb.mxu1 %v2823_v36  ;;  %v2626_v36 = vld [vmem:[#allocation11 + $0xb8] sm:$0xf0] }
 0x520   : > { %v1259_v22 = vmul.f32 %v3672_v31, %v1258_v51 }
 0x521   : > { %v1262_v50 = vpop.permute.xlu0 %1261 }
 0x522   : > { %v1267_v52 = vsel %vm906_vm5, %v1262_v50, 0  ;;  %v1260_v54 = vpack.c.bf16 %v1259_v22, %v1259_v22 }
 0x523   : > { %1276 = vmatpush.bf16.msrb.mxu0 %v1267_v52  ;;  %1531 = vmatpush.bf16.msrb.mxu1 %v2822_v37  ;;  %v2629_v37 = vor.u32 %v2847_v35, %v2626_v36  ;;  %v2546_v35 = vld [vmem:[#allocation11 + $0x18] sm:$0xf0] }
 0x527   : > { %1532 = vmatpush.bf16.msrb.mxu1 %v2821_v38  ;;  %v2600_v38 = vld [vmem:[#allocation11 + $0x80] sm:$0xf] }
 0x529   : > { %v1332_v53 = vpop.permute.xlu0 %1331 }
 0x52a   : > { %v1337_v55 = vsel %vm906_vm5, %v1332_v53, 0 }
 0x52b   : > { %2497 = vmatmul.msk.bf16.vlgmr.msrb.gmra.mxu0 %vm877_vm6, %v1260_v54  ;;  %1346 = vmatpush.bf16.msra.mxu2 %v1337_v55 }
 0x52c   : > { %1533 = vmatpush.bf16.msrb.mxu1 %v2820_v39  ;;  %v2844_v39 = vld [vmem:[#allocation11 + $0x8c] sm:$0xf0] }
 0x52e   : > { %v1068_v56 = vpop.f32.mrf.mxu2 }
 0x52f   : > { %1427 = vrot.lane.b32.xlu1 %v1068_v56, %s3352_s27 }
 0x530   : > { %1534 = vmatpush.bf16.msrb.mxu1 %v2819_v40  ;;  %v2842_v40 = vld [vmem:[#allocation11 + $0x84] sm:$0xf] }
 0x531   : > { %v1402_v57 = vpop.permute.xlu0 %1401  ;;  %v1314_v58 = vpop.xlane.xlu1 %1313 }
 0x532   : > { %v1407_v59 = vsel %vm906_vm5, %v1402_v57, 0  ;;  %3054 = vrcp.f32 %v1314_v58  ;;  %v1326_v0 = vand.u32 2147483648, %v1314_v58  ;;  %v1324_v2 = vand.u32 2147483647, %v1314_v58 }
 0x533   : > { %1416 = vmatpush.bf16.msra.mxu0 %v1407_v59  ;;  %vm1320_vm3 = vweird.f32 %v1314_v58  ;;  %v3060_v59 = vld [vmem:[%s3545_s25] sm:$0xff]  ;;  %s2165_s25 = sshll.u32 %s591_s15, 4  ;;  %s2166_s25 = int_to_ptr.vmem [resolvable:$true] %s2165_s25 }
 0x534   : > { %v1327_v5 = vor.u32 1.1754944e-38, %v1326_v0  ;;  %vm1325_vm8 = vcmp.eq.f32.partialorder %v1324_v2, 8.507059e+37  ;;  %1535 = vmatpush.bf16.msrb.mxu1 %v2818_v42  ;;  %v2854_v0 = vld [vmem:[#allocation11 + $0xe4] sm:$0xf]  ;;  %v2650_v2 = vld [vmem:[#allocation11 + $0xf0] sm:$0xf0]  ;;  %v2601_v42 = vor.u32 %v2844_v39, %v2600_v38 }
 0x535   : > { %v2881_v38 = vld [vmem:[#allocation12 + $0xb8] sm:$0xff] }
 0x536   : > { %v1070_v60 = vpop.f32.mrf.mxu2  ;;  %v2889_v39 = vld [vmem:[#allocation12 + $0xf8] sm:$0xff] }
 0x538   : > { %v3055_v61 = vpop.eup %3054 }
 0x539   : > { %v1316_v63 = vmul.f32 %v3055_v61, %v1314_v58  ;;  %vm1321_vm2 = vweird.f32 %v3055_v61 }
 0x53a   : > { %vm1322_vm7 = vmor %vm1320_vm3, %vm1321_vm2 }
 0x53b   : > { %v1317_v31 = vsub.f32 1.0, %v1316_v63  ;;  %v2648_v63 = vld [vmem:[#allocation11 + $0xe0] sm:$0xf] }
 0x53d   : > { %v1318_v1 = vmul.f32 %v3055_v61, %v1317_v31  ;;  %v2856_v31 = vld [vmem:[#allocation11 + $0xec] sm:$0xf0] }
 0x53f   : > { %v1319_v3 = vadd.f32 %v3055_v61, %v1318_v1  ;;  %v1384_v4 = vpop.xlane.xlu2 %1383  ;;  %v2649_v1 = vor.u32 %v2856_v31, %v2648_v63  ;;  %v2594_v63 = vld [vmem:[#allocation11 + $0x78] sm:$0xf0] }
 0x540   : > { %3056 = vrcp.f32 %v1384_v4  ;;  %v1396_v13 = vand.u32 2147483648, %v1384_v4  ;;  %v1394_v45 = vand.u32 2147483647, %v1384_v4  ;;  %vm1390_vm9 = vweird.f32 %v1384_v4 }
 0x541   : > { %v1323_v6 = vsel %vm1322_vm7, %v3055_v61, %v1319_v3  ;;  %v2656_v3 = vld [vmem:[#allocation11 + $0xe8] sm:$0xf]  ;;  %1774 = vmatpush.bf16.msrb.mxu2 %v2649_v1  ;;  %v2836_v1 = vld [vmem:[#allocation11 + $0x4c] sm:$0xf0] }
 0x542   : > { %v1328_v7 = vsel %vm1325_vm8, %v1327_v5, %v1323_v6  ;;  %v1397_v18 = vor.u32 1.1754944e-38, %v1396_v13  ;;  %vm1395_vm11 = vcmp.eq.f32.partialorder %v1394_v45, 8.507059e+37  ;;  %v2653_v5 = vor.u32 %v2854_v0, %v2650_v2  ;;  %v2852_v45 = vld [vmem:[#allocation11 + $0xcc] sm:$0xf0]  ;;  %v2568_v0 = vld [vmem:[#allocation11 + $0x40] sm:$0xf] }
 0x543   : > { %v1329_v8 = vmul.f32 %v3686_v48, %v1328_v7  ;;  %v2855_v7 = vld [vmem:[#allocation11 + $0xec] sm:$0xf]  ;;  %v2834_v2 = vld [vmem:[#allocation11 + $0x44] sm:$0xf] }
 0x544   : > { %1787 = vmatpush.bf16.msra.mxu3 %v2653_v5  ;;  %v2576_v5 = vld [vmem:[#allocation11 + $0x48] sm:$0xf] }
 0x545   : > { %v1330_v9 = vpack.c.bf16 %v1329_v8, %v1329_v8  ;;  %v2658_v8 = vld [vmem:[#allocation11 + $0xf8] sm:$0xf0] }
 0x546   : > { %v3057_v10 = vpop.eup %3056 }
 0x547   : > { %v1386_v11 = vmul.f32 %v3057_v10, %v1384_v4  ;;  %2499 = vmatmul.msk.bf16.vlgmr.msra.gmra.mxu2 %vm877_vm6, %v1330_v9  ;;  %vm1391_vm5 = vweird.f32 %v3057_v10  ;;  %v2857_v4 = vld [vmem:[#allocation11 + $0xf4] sm:$0xf0]  ;;  %v2661_v9 = vor.u32 %v2855_v7, %v2658_v8 }
 0x548   : > { %vm1392_vm10 = vmor %vm1390_vm9, %vm1391_vm5  ;;  %v2657_v6 = vor.u32 %v2857_v4, %v2656_v3  ;;  %v2569_v3 = vor.u32 %v2836_v1, %v2568_v0  ;;  %v2570_v4 = vld [vmem:[#allocation11 + $0x50] sm:$0xf0] }
 0x549   : > { %v1387_v12 = vsub.f32 1.0, %v1386_v11  ;;  %1813 = vmatpush.bf16.msra.mxu1 %v2661_v9  ;;  %v2573_v7 = vor.u32 %v2834_v2, %v2570_v4  ;;  %v2835_v9 = vld [vmem:[#allocation11 + $0x4c] sm:$0xf]  ;;  %v2876_v2 = vld [vmem:[#allocation12 + $0x90] sm:$0xff] }
 0x54a   : > { %1800 = vmatpush.bf16.msrb.mxu0 %v2657_v6  ;;  %v2837_v6 = vld [vmem:[#allocation11 + $0x54] sm:$0xf0] }
 0x54b   : > { %v1388_v14 = vmul.f32 %v3057_v10, %v1387_v12  ;;  %v2577_v8 = vor.u32 %v2837_v6, %v2576_v5  ;;  %v3019_v5 = vld [vmem:[%s3790_s5] ss:$0 sm:$0xff] }
 0x54d   : > { %v1389_v17 = vadd.f32 %v3057_v10, %v1388_v14  ;;  %v2632_v14 = vld [vmem:[#allocation11 + $0xc0] sm:$0xf] }
 0x54f   : > { %v1393_v20 = vsel %vm1392_vm10, %v3057_v10, %v1389_v17  ;;  %v2850_v17 = vld [vmem:[#allocation11 + $0xc4] sm:$0xf] }
 0x550   : > { %v1398_v21 = vsel %vm1395_vm11, %v1397_v18, %v1393_v20  ;;  %v2633_v18 = vor.u32 %v2852_v45, %v2632_v14  ;;  %v2634_v20 = vld [vmem:[#allocation11 + $0xd0] sm:$0xf0]  ;;  %v2832_v14 = vld [vmem:[#allocation11 + $0x2c] sm:$0xf0]  ;;  %v2830_v45 = vld [vmem:[#allocation11 + $0x24] sm:$0xf] }
 0x551   : > { %v1399_v23 = vmul.f32 %v3692_v47, %v1398_v21  ;;  %v2640_v21 = vld [vmem:[#allocation11 + $0xc8] sm:$0xf] }
 0x552   : > { %1775 = vmatpush.bf16.msrb.mxu2 %v2633_v18  ;;  %v2554_v18 = vld [vmem:[#allocation11 + $0x30] sm:$0xf0] }
 0x553   : > { %v1400_v48 = vpack.c.bf16 %v1399_v23, %v1399_v23  ;;  %v2853_v23 = vld [vmem:[#allocation11 + $0xd4] sm:$0xf0] }
 0x555   : > { %2501 = vmatmul.msk.bf16.vlgmr.msra.gmra.mxu0 %vm877_vm6, %v1400_v48  ;;  %vm1451_vm6 = vcmask 261120   ;;  %v2637_v48 = vor.u32 %v2850_v17, %v2634_v20  ;;  %v2560_v20 = vld [vmem:[#allocation11 + $0x28] sm:$0xf] }
 0x557   : > { %1788 = vmatpush.bf16.msra.mxu3 %v2637_v48 }
 0x588   : > { %v998_v24 = vpop.f32.mrf.mxu0 }
 0x58e   : > { %v1208_v25 = vpop.f32.mrf.mxu2 }
 0x58f   : > { %1435 = vrot.lane.b32.xlu0 %v1208_v25, %s3355_s14  ;;  %v2851_v25 = vld [vmem:[#allocation11 + $0xcc] sm:$0xf] }
 0x590   : > { %v1000_v26 = vpop.f32.mrf.mxu0 }
 0x591   : > { %v2642_v26 = vld [vmem:[#allocation11 + $0xd8] sm:$0xf0] }
 0x596   : > { %v1210_v27 = vpop.f32.mrf.mxu2 }
 0x597   : > { %1423 = vrot.lane.b32.xlu0 %v998_v24, %s3353_s29  ;;  %v2641_v24 = vor.u32 %v2853_v23, %v2640_v21  ;;  %v2645_v27 = vor.u32 %v2851_v25, %v2642_v26  ;;  %v2833_v21 = vld [vmem:[#allocation11 + $0x34] sm:$0xf0]  ;;  %v2557_v23 = vor.u32 %v2830_v45, %v2554_v18  ;;  %v2562_v25 = vld [vmem:[#allocation11 + $0x38] sm:$0xf0]  ;;  %v2536_v26 = vld [vmem:[#allocation11] sm:$0xf] }
 0x598   : > { %v1138_v28 = vpop.f32.mrf.mxu0  ;;  %v2561_v48 = vor.u32 %v2833_v21, %v2560_v20  ;;  %v2860_v45 = vld [vmem:[#allocation12 + $0x10] sm:$0xff]  ;;  %v2874_v18 = vld [vmem:[#allocation12 + $0x80] sm:$0xff]  ;;  %v2867_v21 = vld [vmem:[#allocation12 + $0x48] sm:$0xff] }
 0x599   : > { %1801 = vmatpush.bf16.msrb.mxu0 %v2641_v24  ;;  %1814 = vmatpush.bf16.msra.mxu1 %v2645_v27  ;;  %v2831_v24 = vld [vmem:[#allocation11 + $0x2c] sm:$0xf]  ;;  %v2882_v20 = vld [vmem:[#allocation12 + $0xc0] sm:$0xff] }
 0x59a   : > { %v2565_v27 = vor.u32 %v2831_v24, %v2562_v25  ;;  %v1604_v24 = vld [vmem:[%s3793_s8] sm:$0xf] }
 0x59b   : > { %v1608_v25 = vperm.slane %v1604_v24, 2 }
 0x59d   : > { %1815 = vmatpush.bf16.msra.mxu1 %v2629_v37 }
 0x59f   : > { %1431 = vrot.lane.b32.xlu0 %v1138_v28, %s3351_s26  ;;  %v2616_v28 = vld [vmem:[#allocation11 + $0xa0] sm:$0xf]  ;;  %s2791_s26 = sshll.u32 %s3816_s20, 3 }
 0x5a0   : > { %v1140_v29 = vpop.f32.mrf.mxu0 }
 0x5a1   : > { %v1428_v49 = vpop.permute.xlu1 %1427  ;;  %v2848_v29 = vld [vmem:[#allocation11 + $0xac] sm:$0xf0] }
 0x5a8   : > { %v1278_v62 = vpop.f32.mrf.mxu0 }
 0x5a9   : > { %1439 = vrot.lane.b32.xlu2 %v1278_v62, %s3354_s30  ;;  %v2846_v62 = vld [vmem:[#allocation11 + $0xa4] sm:$0xf]  ;;  %s3818_s30 = sld [smem:[#allocation25_spill]] }
 0x5af   : > { %s2163_s14 = scalar_lea.hbm %s3818_s30, %s2791_s26 }
 0x5b0   : > { %v1280_v15 = vpop.f32.mrf.mxu0  ;;  %s2167_s24 = sshll.u32 %s2163_s14, 4  ;;  %s2168_s24 = int_to_ptr.hbm [resolvable:$true] %s2167_s24 }
 0x5b1   : > { %v2617_v15 = vor.u32 %v2848_v29, %v2616_v28  ;;  %v2828_v28 = vld [vmem:[#allocation11 + $0xc] sm:$0xf0]  ;;  %v2826_v29 = vld [vmem:[#allocation11 + $0x4] sm:$0xf]  ;;  %s3255_s20 = sshra.s32 %s2168_s24, 4  ;;  %s3256_s20 = int_to_ptr.hbm [resolvable:$true] %s3255_s20 }
 0x5b2   : > { %s3257_s12 = scalar_lea.hbm %s3256_s20, 8  ;;  %p3262_p10 = scmp.lt.s32.totalorder %s3256_s20, %s3818_s30 }
 0x5b3   : > { %1776 = vmatpush.bf16.msrb.mxu2 %v2617_v15  ;;  %v2537_v15 = vor.u32 %v2828_v28, %v2536_v26  ;;  %v1609_v26 = vperm.slane %v1604_v24, 3  ;;  %p3258_p1 = scmp.ne.s32.totalorder %s3256_s20, %s3257_s12 }
 0x5b5   : > { %p3259_p3 = pnand %p3258_p1, %p3517_p4 }
 0x5b7   : > { %1777 = vmatpush.bf16.msrb.mxu2 %v2601_v42  ;;  %v2865_v42 = vld [vmem:[#allocation12 + $0x38] sm:$0xff]  ;;  %p3260_p9 = pneg %p3259_p3 }
 0x5ca   : > { %v1348_v47 = vpop.f32.mrf.mxu2 }
 0x5cb   : > { %1443 = vrot.lane.b32.xlu0 %v1348_v47, %s3349_s6  ;;  %v2618_v47 = vld [vmem:[#allocation11 + $0xb0] sm:$0xf0] }
 0x5d2   : > { %v1350_v30 = vpop.f32.mrf.mxu2  ;;  %v1418_v32 = vpop.f32.mrf.mxu0 }
 0x5d3   : > { %1447 = vrot.lane.b32.xlu1 %v1418_v32, %s3350_s11  ;;  %v2624_v30 = vld [vmem:[#allocation11 + $0xa8] sm:$0xf]  ;;  %v2849_v32 = vld [vmem:[#allocation11 + $0xb4] sm:$0xf0]  ;;  %s3817_s11 = sld [smem:[#allocation24_spill]] }
 0x5d4   : > { %v2625_v34 = vor.u32 %v2849_v32, %v2624_v30  ;;  %v2544_v30 = vld [vmem:[#allocation11 + $0x8] sm:$0xf]  ;;  %v2829_v32 = vld [vmem:[#allocation11 + $0x14] sm:$0xf0] }
 0x5d6   : > { %1802 = vmatpush.bf16.msrb.mxu0 %v2625_v34  ;;  %v2545_v34 = vor.u32 %v2829_v32, %v2544_v30 }
 0x5da   : > { %v1420_v33 = vpop.f32.mrf.mxu0 }
 0x5db   : > { %v2621_v33 = vor.u32 %v2846_v62, %v2618_v47  ;;  %v2538_v62 = vld [vmem:[#allocation11 + $0x10] sm:$0xf0] }
 0x5dc   : > { %v2541_v47 = vor.u32 %v2826_v29, %v2538_v62 }
 0x5dd   : > { %1789 = vmatpush.bf16.msra.mxu3 %v2621_v33  ;;  %v2827_v33 = vld [vmem:[#allocation11 + $0xc] sm:$0xf] }
 0x5de   : > { %v2549_v36 = vor.u32 %v2827_v33, %v2546_v35 }
 0x601   : > { %v1436_v43 = vpop.permute.xlu0 %1435 }
 0x603   : > { %v1440_v53 = vpop.permute.xlu2 %1439 }
 0x609   : > { %v1424_v19 = vpop.permute.xlu0 %1423 }
 0x60a   : > { %v1450_v44 = vsel %vm856_vm4, %v3636_v41, %v1424_v19  ;;  %v2608_v19 = vld [vmem:[#allocation11 + $0x88] sm:$0xf] }
 0x60b   : > { %v1452_v50 = vsel %vm1451_vm6, %v1450_v44, %v1428_v49  ;;  %v2845_v44 = vld [vmem:[#allocation11 + $0x94] sm:$0xf0] }
 0x60c   : > { %v2609_v49 = vor.u32 %v2845_v44, %v2608_v19  ;;  %v2880_v19 = vld [vmem:[#allocation12 + $0xb0] sm:$0xff] }
 0x60d   : > { %v2888_v44 = vld [vmem:[#allocation12 + $0xf0] sm:$0xff] }
 0x60e   : > { %1803 = vmatpush.bf16.msrb.mxu0 %v2609_v49  ;;  %v2864_v49 = vld [vmem:[#allocation12 + $0x30] sm:$0xff] }
 0x611   : > { %v1432_v46 = vpop.permute.xlu0 %1431 }
 0x612   : > { %v1454_v51 = vsel %vm1453_vm12, %v1452_v50, %v1432_v46  ;;  %v2843_v50 = vld [vmem:[#allocation11 + $0x8c] sm:$0xf] }
 0x613   : > { %v1456_v52 = vsel %vm1455_vm13, %v1454_v51, %v1436_v43  ;;  %v2602_v43 = vld [vmem:[#allocation11 + $0x90] sm:$0xf0]  ;;  %v2610_v51 = vld [vmem:[#allocation11 + $0x98] sm:$0xf0] }
 0x614   : > { %v1458_v54 = vsel %vm1457_vm14, %v1456_v52, %v1440_v53  ;;  %v2605_v46 = vor.u32 %v2842_v40, %v2602_v43  ;;  %v2613_v52 = vor.u32 %v2843_v50, %v2610_v51  ;;  %v2840_v53 = vld [vmem:[#allocation11 + $0x6c] sm:$0xf0]  ;;  %v2873_v43 = vld [vmem:[#allocation12 + $0x78] sm:$0xff]  ;;  %v2879_v51 = vld [vmem:[#allocation12 + $0xa8] sm:$0xff] }
 0x615   : > { %v2872_v50 = vld [vmem:[#allocation12 + $0x70] sm:$0xff] }
 0x616   : > { %1790 = vmatpush.bf16.msra.mxu3 %v2605_v46  ;;  %1816 = vmatpush.bf16.msra.mxu1 %v2613_v52  ;;  %v2887_v52 = vld [vmem:[#allocation12 + $0xe8] sm:$0xff] }
 0x63d   : > { %v1444_v22 = vpop.permute.xlu0 %1443 }
 0x63e   : > { %v1460_v55 = vsel %vm1459_vm15, %v1458_v54, %v1444_v22  ;;  %v2584_v22 = vld [vmem:[#allocation11 + $0x60] sm:$0xf]  ;;  %v2838_v54 = vld [vmem:[#allocation11 + $0x64] sm:$0xf] }
 0x645   : > { %v1448_v56 = vpop.permute.xlu1 %1447 }
 0x646   : > { %v1462_v57 = vsel %vm1461_vm0, %v1460_v55, %v1448_v56  ;;  %v2585_v55 = vor.u32 %v2840_v53, %v2584_v22  ;;  %v2586_v56 = vld [vmem:[#allocation11 + $0x70] sm:$0xf0]  ;;  %v2863_v22 = vld [vmem:[#allocation12 + $0x28] sm:$0xff]  ;;  %v2878_v53 = vld [vmem:[#allocation12 + $0xa0] sm:$0xff] }
 0x647   : > { %v1463_v58 = vpack.c.bf16 %v1462_v57, %v1462_v57  ;;  %v2592_v57 = vld [vmem:[#allocation11 + $0x68] sm:$0xf] }
 0x648   : > { %1778 = vmatpush.bf16.msrb.mxu2 %v2585_v55 }
 0x649   : > { %1536 = vmatmul.bf16.vlgmr.msrb.gmra.mxu1 %v1463_v58  ;;  %v2841_v58 = vld [vmem:[#allocation11 + $0x74] sm:$0xf0] }
 0x64c   : > { %1779 = vmatpush.bf16.msrb.mxu2 %v2569_v3  ;;  %v2884_v3 = vld [vmem:[#allocation12 + $0xd0] sm:$0xff] }
 0x6c6   : > { %v1537_v41 = vpop.f32.mrf.mxu1 }
 0x6c7   : > { %v3724_v60 = vadd.f32 %v3060_v59, %v1537_v41  ;;  %v2589_v41 = vor.u32 %v2838_v54, %v2586_v56  ;;  %v2593_v59 = vor.u32 %v2841_v58, %v2592_v57  ;;  %v2886_v54 = vld [vmem:[#allocation12 + $0xe0] sm:$0xff] }
 0x6c8   : > { %v2862_v56 = vld [vmem:[#allocation12 + $0x20] sm:$0xff] }
 0x6c9   : > { %1543 = vadd.xlane.f32.xlu0 %v3724_v60  ;;  %1791 = vmatpush.bf16.msra.mxu3 %v2589_v41  ;;  %v2870_v57 = vld [vmem:[#allocation12 + $0x60] sm:$0xff] }
 0x6ca   : > { %1804 = vmatpush.bf16.msrb.mxu0 %v2593_v59  ;;  %v2877_v59 = vld [vmem:[#allocation12 + $0x98] sm:$0xff] }
 0x6cd   : > { %1792 = vmatpush.bf16.msra.mxu3 %v2573_v7 }
 0x6ce   : > { %v1539_v61 = vpop.f32.mrf.mxu1  ;;  %1805 = vmatpush.bf16.msrb.mxu0 %v2577_v8  ;;  %v3020_v8 = vld [vmem:[#allocation9] ss:$0 sm:$0xff] }
 0x6cf   : > { %v2839_v61 = vld [vmem:[#allocation11 + $0x6c] sm:$0xf] }
 0x6d0   : > { %v2597_v31 = vor.u32 %v2839_v61, %v2594_v63  ;;  %v2885_v61 = vld [vmem:[#allocation12 + $0xd8] sm:$0xff] }
 0x6d1   : > { %1793 = vmatpush.bf16.msra.mxu3 %v2557_v23  ;;  %v2861_v63 = vld [vmem:[#allocation12 + $0x18] sm:$0xff]  ;;  %v2858_v23 = vld [vmem:[#allocation12] sm:$0xff] }
 0x6d2   : > { %1817 = vmatpush.bf16.msra.mxu1 %v2597_v31  ;;  %1806 = vmatpush.bf16.msrb.mxu0 %v2561_v48  ;;  %v2869_v31 = vld [vmem:[#allocation12 + $0x58] sm:$0xff]  ;;  %v2866_v48 = vld [vmem:[#allocation12 + $0x40] sm:$0xff] }
 0x6d5   : > { %1794 = vmatpush.bf16.msra.mxu3 %v2541_v47  ;;  %v1607_v47 = vperm.slane %v1604_v24, 1 }
 0x6d6   : > { %1807 = vmatpush.bf16.msrb.mxu0 %v2545_v34 }
 0x6d9   : > { %2107 = vmatpush.bf16.msrb.mxu3 %v2873_v43 }
 0x6da   : > { %2120 = vmatpush.bf16.msra.mxu0 %v2881_v38 }
 0x6dd   : > { %2108 = vmatpush.bf16.msrb.mxu3 %v2872_v50 }
 0x6de   : > { %2121 = vmatpush.bf16.msra.mxu0 %v2880_v19 }
 0x6e2   : > { %2122 = vmatpush.bf16.msra.mxu0 %v2879_v51 }
 0x6e6   : > { %2123 = vmatpush.bf16.msra.mxu0 %v2878_v53 }
 0x6ea   : > { %2124 = vmatpush.bf16.msra.mxu0 %v2877_v59 }
 0x6ee   : > { %2125 = vmatpush.bf16.msra.mxu0 %v2876_v2 }
 0x73c   : > { %v1544_v10 = vpop.xlane.xlu0 %1543 }
 0x73d   : > { %v1545_v11 = vmul.f32 %v1544_v10, %v3564_v16  ;;  %v2578_v10 = vld [vmem:[#allocation11 + $0x58] sm:$0xf0] }
 0x73f   : > { %v3729_v12 = vsub.f32 %v3724_v60, %v1545_v11  ;;  %v2581_v11 = vor.u32 %v2835_v9, %v2578_v10 }
 0x741   : > { %v1547_v13 = vmul.f32 %v3729_v12, %v3729_v12  ;;  %1818 = vmatpush.bf16.msra.mxu1 %v2581_v11 }
 0x743   : > { %1548 = vadd.xlane.f32.xlu1 %v1547_v13  ;;  %v2552_v13 = vld [vmem:[#allocation11 + $0x20] sm:$0xf] }
 0x744   : > { %v2553_v17 = vor.u32 %v2832_v14, %v2552_v13  ;;  %v2875_v13 = vld [vmem:[#allocation12 + $0x88] sm:$0xff] }
 0x745   : > { %1819 = vmatpush.bf16.msra.mxu1 %v2565_v27  ;;  %v2883_v14 = vld [vmem:[#allocation12 + $0xc8] sm:$0xff]  ;;  %2126 = vmatpush.bf16.msra.mxu0 %v2875_v13 }
 0x746   : > { %1780 = vmatpush.bf16.msrb.mxu2 %v2553_v17  ;;  %v2868_v17 = vld [vmem:[#allocation12 + $0x50] sm:$0xff] }
 0x749   : > { %1820 = vmatpush.bf16.msra.mxu1 %v2549_v36  ;;  %2127 = vmatpush.bf16.msra.mxu0 %v2874_v18 }
 0x74a   : > { %1781 = vmatpush.bf16.msrb.mxu2 %v2537_v15  ;;  %v1606_v15 = vperm.slane %v1604_v24, 0 }
 0x74d   : > { %2133 = vmatpush.bf16.msrb.mxu1 %v2889_v39 }
 0x74e   : > { %2094 = vmatpush.bf16.msra.mxu2 %v2865_v42 }
 0x751   : > { %2134 = vmatpush.bf16.msrb.mxu1 %v2888_v44 }
 0x752   : > { %2095 = vmatpush.bf16.msra.mxu2 %v2864_v49 }
 0x755   : > { %2135 = vmatpush.bf16.msrb.mxu1 %v2887_v52 }
 0x756   : > { %2096 = vmatpush.bf16.msra.mxu2 %v2863_v22 }
 0x759   : > { %2136 = vmatpush.bf16.msrb.mxu1 %v2886_v54 }
 0x75a   : > { %2097 = vmatpush.bf16.msra.mxu2 %v2862_v56 }
 0x75d   : > { %2137 = vmatpush.bf16.msrb.mxu1 %v2885_v61 }
 0x75e   : > { %2098 = vmatpush.bf16.msra.mxu2 %v2861_v63 }
 0x761   : > { %2138 = vmatpush.bf16.msrb.mxu1 %v2884_v3 }
 0x762   : > { %2099 = vmatpush.bf16.msra.mxu2 %v2860_v45 }
 0x765   : > { %2139 = vmatpush.bf16.msrb.mxu1 %v2883_v14 }
 0x769   : > { %2140 = vmatpush.bf16.msrb.mxu1 %v2882_v20 }
 0x7b6   : > { %v1549_v37 = vpop.xlane.xlu1 %1548 }
 0x7b7   : > { %v1550_v40 = vmul.f32 %v1549_v37, %v3564_v16  ;;  %v2871_v16 = vld [vmem:[#allocation12 + $0x68] sm:$0xff] }
 0x7b8   : > { %2109 = vmatpush.bf16.msrb.mxu3 %v2871_v16  ;;  %v3021_v16 = vld [vmem:[%s3817_s11] ss:$0 sm:$0xff]  ;;  %s3261_s11 = scalar_lea.hbm %s3818_s30, 16 }
 0x7b9   : > { %v1551_v46 = vadd.f32 1e-05, %v1550_v40  ;;  %p3263_p11 = scmp.lt.s32.totalorder %s3261_s11, %s3257_s12 }
 0x7bb   : > { %3058 = vrsqrt.f32 %v1551_v46  ;;  %vm1558_vm1 = vweird.f32 %v1551_v46  ;;  %p3264_p12 = por %p3263_p11, %p3262_p10 }
 0x7bc   : > { %2110 = vmatpush.bf16.msrb.mxu3 %v2870_v57 }
 0x7bd   : > { %p3265_p13 = pnand %p3264_p12, %p3260_p9 }
 0x7c0   : > { %2111 = vmatpush.bf16.msrb.mxu3 %v2869_v31 }
 0x7c1   : > { %v3059_v55 = vpop.eup %3058 }
 0x7c2   : > { %v1553_v58 = vmul.f32 %v3059_v55, %v1551_v46  ;;  %vm1559_vm4 = vweird.f32 %v3059_v55 }
 0x7c3   : > { %vm1560_vm2 = vmor %vm1558_vm1, %vm1559_vm4 }
 0x7c4   : > { %v1554_v41 = vmul.f32 %v3059_v55, %v1553_v58  ;;  %2112 = vmatpush.bf16.msrb.mxu3 %v2868_v17 }
 0x7c6   : > { %v1555_v0 = vmul.f32 0.5, %v1554_v41 }
 0x7c8   : > { %v1556_v1 = vsub.f32 1.5, %v1555_v0  ;;  %2113 = vmatpush.bf16.msrb.mxu3 %v2867_v21 }
 0x7ca   : > { %v1557_v4 = vmul.f32 %v3059_v55, %v1556_v1 }
 0x7cc   : > { %v1561_v6 = vsel %vm1560_vm2, %v3059_v55, %v1557_v4  ;;  %2114 = vmatpush.bf16.msrb.mxu3 %v2866_v48 }
 0x7cd   : > { %v1562_v7 = vmul.f32 %v1561_v6, %v3729_v12  ;;  %v2859_v12 = vld [vmem:[#allocation12 + $0x8] sm:$0xff] }
 0x7ce   : > { %2100 = vmatpush.bf16.msra.mxu2 %v2859_v12 }
 0x7cf   : > { %v1566_v9 = vmul.f32 %v3019_v5, %v1562_v7 }
 0x7d1   : > { %v1570_v10 = vadd.f32 %v3020_v8, %v1566_v9 }
 0x7d2   : > { %2101 = vmatpush.bf16.msra.mxu2 %v2858_v23 }
 0x7d3   : > { %v1571_v11 = vpack.c.bf16 %v1570_v10, %v1570_v10 }
 0x7d5   : > { %1782 = vmatmul.bf16.vlgmr.msrb.gmra.mxu2 %v1571_v11  ;;  %1795 = vmatmul.bf16.vlgmr.msra.gmra.mxu3 %v1571_v11 }
 0x7d6   : > { %1808 = vmatmul.bf16.vlgmr.msrb.gmra.mxu0 %v1571_v11  ;;  %1821 = vmatmul.bf16.vlgmr.msra.gmra.mxu1 %v1571_v11 }
 0x853   : > { %v1809_v27 = vpop.f32.mrf.mxu0  ;;  %v1822_v28 = vpop.f32.mrf.mxu1 }
 0x854   : > { %v1810_v29 = vadd.f32 %v1809_v27, %v1608_v25  ;;  %v1823_v62 = vadd.f32 %v1822_v28, %v1609_v26 }
 0x856   : > { %v1828_v30 = vmax.f32 %v1810_v29, 0.0  ;;  %v1829_v32 = vmax.f32 %v1823_v62, 0.0 }
 0x858   : > { %v1832_v33 = vpack.c.bf16 %v1828_v30, %v1828_v30  ;;  %v1833_v34 = vpack.c.bf16 %v1829_v32, %v1829_v32  ;;  %v1783_v35 = vpop.f32.mrf.mxu2  ;;  %v1796_v36 = vpop.f32.mrf.mxu3 }
 0x859   : > { %v1784_v37 = vadd.f32 %v1783_v35, %v1606_v15  ;;  %v1797_v38 = vadd.f32 %v1796_v36, %v1607_v47 }
 0x85a   : > { %2128 = vmatmul.bf16.vlgmr.msra.gmra.mxu0 %v1832_v33  ;;  %2141 = vmatmul.bf16.vlgmr.msrb.gmra.mxu1 %v1833_v34 }
 0x85b   : > { %v1826_v39 = vmax.f32 %v1784_v37, 0.0  ;;  %v1827_v40 = vmax.f32 %v1797_v38, 0.0  ;;  %v1811_v42 = vpop.f32.mrf.mxu0  ;;  %v1824_v43 = vpop.f32.mrf.mxu1 }
 0x85d   : > { %v1830_v19 = vpack.c.bf16 %v1826_v39, %v1826_v39  ;;  %v1831_v44 = vpack.c.bf16 %v1827_v40, %v1827_v40 }
 0x85f   : > { %2102 = vmatmul.bf16.vlgmr.msra.gmra.mxu2 %v1830_v19  ;;  %2115 = vmatmul.bf16.vlgmr.msrb.gmra.mxu3 %v1831_v44 }
 0x860   : > { %v1785_v46 = vpop.f32.mrf.mxu2  ;;  %v1798_v49 = vpop.f32.mrf.mxu3 }
 0x8d7   : > { %v2129_v50 = vpop.f32.mrf.mxu0  ;;  %v2142_v51 = vpop.f32.mrf.mxu1 }
 0x8df   : > { %v2131_v52 = vpop.f32.mrf.mxu0  ;;  %v2144_v22 = vpop.f32.mrf.mxu1 }
 0x8e2   : > { %v2103_v53 = vpop.f32.mrf.mxu2  ;;  %v2116_v54 = vpop.f32.mrf.mxu3 }
 0x8e3   : > { %v2104_v55 = vadd.f32 %v3021_v16, %v2103_v53 }
 0x8e5   : > { %v2117_v56 = vadd.f32 %v2116_v54, %v2104_v55 }
 0x8e7   : > { %v2130_v57 = vadd.f32 %v2129_v50, %v2117_v56 }
 0x8e9   : > { %v2143_v58 = vadd.f32 %v2142_v51, %v2130_v57 }
 0x8ea   : > { %v2105_v41 = vpop.f32.mrf.mxu2  ;;  %v2118_v59 = vpop.f32.mrf.mxu3 }
 0x8eb   : > { %v2146_v61 = vadd.f32 %v2143_v58, %v3724_v60 }
 0x8ed   : > { %2151 = vst [vmem:[%s591_s15] sm:$0xff] %v2146_v61 }
 0x8ee   : > { %3268 = shalt.err (!%p3265_p13)
}
 0x8ef   : > { %2912 = dma.vmem_to_hbm [thread:$0]  (%p3517_p4), %s2166_s25, 128, %s2168_s24, %s2153_s28  }
 0x8f0 PF: > { %s2179_s2 = sand.u32 1, %s3315_s17   ;;  %p2935_p0 = pnand %p2379_p6, %p3525_p7 }
 0x8f1   : > { %s2180_s29 = scalar_lea.sflag [#allocation5], %s2179_s2 }
 0x8f2   : > { %p2936_p2 = pneg %p2935_p0 }
 0x8f4   : > { %3310 = dma.done.wait (%p2936_p2), %s2180_s29, 128  }
 0x8f5   : > { %3312 = vsyncadd (%p2936_p2), %s2180_s29, 4294967168  ;;  %s30_s22 = sadd.s32 1, %s3335_s22   ;;  %s3819_s17 = smov %s3319_s18 }
 0x8f6   : > { %p27_p5 = scmp.ge.s32.totalorder %s30_s22, 4   ;;  %s3820_s18 = smov %s3323_s19 }
 0x8f7   : > { %s3821_s19 = smov %s3523_s23  ;;  %s3822_s20 = smov %s3331_s21 }
 0x8f8   : > { %s3823_s21 = smov %s3825_s13  ;;  %29 = sbr.rel (!%p27_p5) target bundleno = 15 (0xf), region = 157 }
 0x8fd   :  { %2186 = vsyncpa [#allocation4], 1 }
 0x8fe   :  { %2188 = vsyncpa [#allocation4 + $0x1], 1 }
 0x8ff   :  { %2189 = vsyncpa [#allocation7], 1 }
 0x900   :  { %2190 = vsyncpa [#allocation10], 1 }
 0x901   :  { %2191 = vsyncpa [#allocation13], 1 }
 0x902   :  { %2192 = vsyncpa [#allocation5], 1 }
 0x903   :  { %2194 = vsyncpa [#allocation5 + $0x1], 1 }

</bundles_post_ra>
